<compile_context>
chip_gen: v7x
topology: tpu7x:2x2x1
jax: 0.10.0
libtpu: 0.0.40
codegen_flags: <defaults>
</compile_context>

<pallas_src>
import functools

import jax
import jax.numpy as jnp
from jax import lax
from jax.experimental import pallas as pl
from jax.experimental.pallas import tpu as pltpu


def _round_up(x, m):
    return (x + m - 1) // m * m


def _rnn_kernel(num_layers, seq_len, proj_chunk, split_batch, *refs):
    """Refs (per batch block):

      x_ref                       (T, Bblk, D)
      [wihT_l, whhT_l, b_l] * L   (Din_l, Hp), (Hp, Hp), (1, Hp)  with b = b_ih+b_hh
      wfcT, bfc                   (Hp, Op), (1, Op)
      out_ref                     (Bblk, Op)
      buf (scratch)               (T, Bblk, Hp)   projection / hidden sequence
    """
    x_ref = refs[0]
    layer_refs = refs[1:1 + 3 * num_layers]
    wfc_ref = refs[1 + 3 * num_layers]
    bfc_ref = refs[2 + 3 * num_layers]
    out_ref = refs[3 + 3 * num_layers]
    buf = refs[4 + 3 * num_layers]

    T = seq_len
    Bblk, Hp = buf.shape[1], buf.shape[2]
    cdt = buf.dtype

    half = Bblk // 2
    # Partial unroll exposes neighbouring steps' ld/st + casts to the scheduler.
    unroll = True if T <= 16 else 8

    h_chunks = None
    for l in range(num_layers):
        wih_ref, whh_ref, b_ref = layer_refs[3 * l:3 * l + 3]
        wih = wih_ref[...]                            # (Din, Hp)
        whh = whh_ref[...]                            # (Hp, Hp)
        b = b_ref[...].astype(jnp.float32)            # (1, Hp)

        src = x_ref if l == 0 else buf

        # ---- hoisted input projection, chunked along T ------------------------
        # One (Tc*Bblk, Din) @ (Din, Hp) MXU GEMM per chunk, bias folded in; the
        # f32 intermediate is bounded to (Tc*Bblk, Hp).
        Tc = proj_chunk

        def do_chunk(start, size, src=src, wih=wih, b=b):
            chunk = src[pl.ds(start, size)]                       # (size, Bblk, Din)
            p = jnp.dot(chunk.reshape(size * Bblk, chunk.shape[-1]), wih,
                        preferred_element_type=jnp.float32) + b
            buf[pl.ds(start, size)] = p.reshape(size, Bblk, Hp).astype(cdt)

        n_full = T // Tc
        rem = T - n_full * Tc
        if n_full > 0:
            def chunk_body(c, carry, Tc=Tc, do_chunk=do_chunk):
                do_chunk(pl.multiple_of(c * Tc, Tc), Tc)
                return carry
            lax.fori_loop(0, n_full, chunk_body, 0)
        if rem > 0:
            do_chunk(n_full * Tc, rem)

        # ---- serial recurrence: h carried in registers ------------------------
        write_back = l < num_layers - 1               # top layer: skip the store

        if split_batch:
            # Two independent batch chains: chain B's matmul fills the MXU while
            # chain A is in the VPU/EUP (add + tanh), hiding drain latency.
            def step(t, carry, whh=whh, write_back=write_back):
                h_a, h_b = carry
                p = buf[t].astype(jnp.float32)                    # (Bblk, Hp)
                za = jnp.dot(h_a, whh, preferred_element_type=jnp.float32)
                zb = jnp.dot(h_b, whh, preferred_element_type=jnp.float32)
                ha_new = jnp.tanh(p[:half] + za).astype(cdt)
                hb_new = jnp.tanh(p[half:] + zb).astype(cdt)
                if write_back:
                    buf[t, 0:half, :] = ha_new
                    buf[t, half:Bblk, :] = hb_new
                return ha_new, hb_new

            init = (jnp.zeros((half, Hp), cdt),
                    jnp.zeros((Bblk - half, Hp), cdt))
            h_chunks = lax.fori_loop(0, T, step, init, unroll=unroll)
        else:
            def step(t, h, whh=whh, write_back=write_back):
                acc = buf[t].astype(jnp.float32) + jnp.dot(
                    h, whh, preferred_element_type=jnp.float32)
                h_new = jnp.tanh(acc).astype(cdt)
                if write_back:
                    buf[t] = h_new
                return h_new

            h_chunks = (lax.fori_loop(0, T, step, jnp.zeros((Bblk, Hp), cdt),
                                      unroll=unroll),)

    # ---- fc(out[:, -1, :]) on the last hidden state of the top layer ----------
    wfc = wfc_ref[...]
    bfc = bfc_ref[...].astype(jnp.float32)
    row = 0
    for hc in h_chunks:
        o = jnp.dot(hc, wfc, preferred_element_type=jnp.float32) + bfc
        out_ref[row:row + hc.shape[0], :] = o.astype(out_ref.dtype)
        row += hc.shape[0]


def rnn_model_forward(x, params, hidden_dim, output_dim, num_layers, *,
                      compute_dtype=jnp.float32, batch_block=256,
                      proj_chunk=16):
    """x: (B, T, D) float32, batch_first like the PyTorch module."""
    B, T, D = x.shape
    H, O = hidden_dim, output_dim

    # Lane-friendly padded sizes (zero padding keeps the math exact).
    Hp = _round_up(H, 128)
    Op = _round_up(O, 128)
    itemsize = jnp.dtype(compute_dtype).itemsize

    # ---- weights: transposed, zero-padded, lane-dense -------------------------
    def pad2(w, r, c):
        return jnp.pad(w, ((0, r - w.shape[0]), (0, c - w.shape[1])))

    weight_arrays = []
    for l in range(num_layers):
        wih, whh, bih, bhh = params[f"rnn_{l}"]
        din = D if l == 0 else Hp
        wihT = pad2(wih.T, din, Hp).astype(compute_dtype)        # (Din, Hp)
        whhT = pad2(whh.T, Hp, Hp).astype(compute_dtype)         # (Hp, Hp)
        bsum = jnp.pad(bih + bhh, (0, Hp - H)).reshape(1, Hp).astype(jnp.float32)
        weight_arrays += [wihT, whhT, bsum]
    wfc, bfc = params["fc"]
    wfcT = pad2(wfc.T, Hp, Op).astype(compute_dtype)             # (Hp, Op)
    bfc_p = jnp.pad(bfc, (0, Op - O)).reshape(1, Op).astype(jnp.float32)
    weight_arrays += [wfcT, bfc_p]
    weight_bytes = sum(int(a.size) * a.dtype.itemsize for a in weight_arrays)

    # Weights/biases never change across grid steps -> request a single VMEM copy.
    single_buffered = True

    def _const_spec(shape):
        nonlocal single_buffered
        idx = lambda i, _n=len(shape): (0,) * _n
        try:
            return pl.BlockSpec(shape, idx, pipeline_mode=pl.Buffered(1))
        except (AttributeError, TypeError):
            single_buffered = False
            return pl.BlockSpec(shape, idx)

    weight_specs = [_const_spec(a.shape) for a in weight_arrays]

    # ---- VMEM budget & batch-block selection -----------------------------------
    try:
        vmem_cap = int(pltpu.get_tpu_info().vmem_capacity_bytes)
    except Exception:
        vmem_cap = 64 << 20            # conservative: assume v7x per-TC VMEM
    if vmem_cap <= 0:
        vmem_cap = 64 << 20
    budget = max(16 << 20, min(vmem_cap - (8 << 20), 100 << 20))

    Tc = max(1, min(T, proj_chunk))
    wbuf_factor = 1 if single_buffered else 2

    def vmem_need(bblk):
        return (2 * T * bblk * D * itemsize          # double-buffered x block
                + T * bblk * Hp * itemsize           # projection / hidden scratch
                + Tc * bblk * Hp * 4                 # f32 projection chunk
                + wbuf_factor * weight_bytes         # resident weights
                + 2 * bblk * Op * 4                  # double-buffered output
                + (2 << 20))                         # internal scratch margin

    # Aim for >= 2 batch blocks (megacore on v7x) whenever the batch allows it.
    if B <= 8:
        Bblk = 8
    else:
        Bblk = min(batch_block, max(8, _round_up((B + 1) // 2, 8)))
    while Bblk > 8 and vmem_need(Bblk) > budget:
        Bblk = max(8, _round_up(Bblk // 2, 8))

    Bp = _round_up(B, Bblk)
    nb = Bp // Bblk
    # Two independent hidden chains per step need sublane-aligned halves.
    split_batch = (Bblk >= 16) and (Bblk % 16 == 0)

    # Time-major (T, B, D); pad batch.  D is kept compact (block last dim == full
    # array dim is legal); padding D to 128 would inflate HBM traffic for small D.
    x_tm = jnp.transpose(x, (1, 0, 2)).astype(compute_dtype)
    if Bp != B:
        x_tm = jnp.pad(x_tm, ((0, 0), (0, Bp - B), (0, 0)))

    in_specs = [pl.BlockSpec((T, Bblk, D), lambda i: (0, i, 0))] + weight_specs
    flat_inputs = [x_tm] + weight_arrays

    vmem_limit = int(min(budget, max(32 << 20, vmem_need(Bblk) + (2 << 20))))

    flops_block = (2 * T * Bblk * (D * Hp
                                   + (num_layers - 1) * Hp * Hp   # layer>0 proj
                                   + num_layers * Hp * Hp)        # recurrences
                   + 2 * Bblk * Hp * Op)
    cost = pl.CostEstimate(
        flops=int(nb * flops_block),
        transcendentals=int(nb * num_layers * T * Bblk * Hp),
        bytes_accessed=int(int(x_tm.size) * itemsize + weight_bytes + Bp * Op * 4),
    )

    kernel = functools.partial(_rnn_kernel, num_layers, T, Tc, split_batch)

    out_padded = pl.pallas_call(
        kernel,
        out_shape=jax.ShapeDtypeStruct((Bp, Op), jnp.float32),
        grid=(nb,),
        in_specs=in_specs,
        out_specs=pl.BlockSpec((Bblk, Op), lambda i: (i, 0)),
        scratch_shapes=[pltpu.VMEM((T, Bblk, Hp), compute_dtype)],
        compiler_params=pltpu.CompilerParams(
            dimension_semantics=("parallel",),
            vmem_limit_bytes=vmem_limit),
        cost_estimate=cost,
    )(*flat_inputs)

    return out_padded[:B, :O]


def init_params(key, input_dim, hidden_dim, output_dim, num_layers):
    """PyTorch-style uniform(-1/sqrt(fan), 1/sqrt(fan)) init, deterministic."""
    params = {}
    k_rnn = 1.0 / jnp.sqrt(jnp.float32(hidden_dim))
    for l in range(num_layers):
        din = input_dim if l == 0 else hidden_dim
        key, k1, k2, k3, k4 = jax.random.split(key, 5)
        params[f"rnn_{l}"] = (
            jax.random.uniform(k1, (hidden_dim, din), jnp.float32, -k_rnn, k_rnn),
            jax.random.uniform(k2, (hidden_dim, hidden_dim), jnp.float32, -k_rnn, k_rnn),
            jax.random.uniform(k3, (hidden_dim,), jnp.float32, -k_rnn, k_rnn),
            jax.random.uniform(k4, (hidden_dim,), jnp.float32, -k_rnn, k_rnn),
        )
    k_fc = 1.0 / jnp.sqrt(jnp.float32(hidden_dim))
    key, k1, k2 = jax.random.split(key, 3)
    params["fc"] = (
        jax.random.uniform(k1, (output_dim, hidden_dim), jnp.float32, -k_fc, k_fc),
        jax.random.uniform(k2, (output_dim,), jnp.float32, -k_fc, k_fc),
    )
    return params


def rnn_model_reference(x, params, hidden_dim, output_dim, num_layers):
    """Pure-JAX reference matching torch nn.RNN(tanh) + Linear semantics."""
    B, T, _ = x.shape
    inp = x
    for l in range(num_layers):
        wih, whh, bih, bhh = params[f"rnn_{l}"]
        h = jnp.zeros((B, hidden_dim), jnp.float32)
        hs = []
        for t in range(T):
            h = jnp.tanh(inp[:, t, :] @ wih.T + bih + h @ whh.T + bhh)
            hs.append(h)
        inp = jnp.stack(hs, axis=1)
    wfc, bfc = params["fc"]
    return inp[:, -1, :] @ wfc.T + bfc


if __name__ == "__main__":
    # Small shapes consistent with the module's forward: x is (batch, seq, input_dim)
    B, T = 2, 8
    input_dim, hidden_dim, output_dim, num_layers = 16, 32, 4, 2

    key = jax.random.PRNGKey(0)
    key, kx = jax.random.split(key)
    x = jax.random.normal(kx, (B, T, input_dim), jnp.float32)

    params = init_params(key, input_dim, hidden_dim, output_dim, num_layers)

    out = rnn_model_forward(x, params, hidden_dim, output_dim, num_layers)
    out = jax.block_until_ready(out)

    ref = rnn_model_reference(x, params, hidden_dim, output_dim, num_layers)
    assert out.shape == (B, output_dim)
    assert jnp.allclose(out, ref, atol=1e-5, rtol=1e-5), (out, ref)

    print("KERNEL_OK")
</pallas_src>

<mosaic_0001>
module attributes {stable_mosaic.version = 11 : i64} {
  func.func @_rnn_kernel(%arg0: i32, %arg1: memref<8x8x16xf32, #tpu.memory_space<vmem>>, %arg2: memref<16x128xf32, #tpu.memory_space<vmem>>, %arg3: memref<128x128xf32, #tpu.memory_space<vmem>>, %arg4: memref<1x128xf32, #tpu.memory_space<vmem>>, %arg5: memref<128x128xf32, #tpu.memory_space<vmem>>, %arg6: memref<128x128xf32, #tpu.memory_space<vmem>>, %arg7: memref<1x128xf32, #tpu.memory_space<vmem>>, %arg8: memref<128x128xf32, #tpu.memory_space<vmem>>, %arg9: memref<1x128xf32, #tpu.memory_space<vmem>>, %arg10: memref<8x128xf32, #tpu.memory_space<vmem>>, %arg11: memref<8x8x128xf32, #tpu.memory_space<vmem>>) attributes {dimension_semantics = [#tpu.dimension_semantics<parallel>], iteration_bounds = array<i64: 1>, scalar_prefetch = 0 : i64, scratch_operands = 1 : i64, tpu.core_type = #tpu.core_type<tc>, window_params = [{transform_indices = @transform_0, window_bounds = array<i64: 8, 8, 16>}, {pipeline_mode = #tpu.pipeline_mode<synchronous>, transform_indices = @transform_1, window_bounds = array<i64: 16, 128>}, {pipeline_mode = #tpu.pipeline_mode<synchronous>, transform_indices = @transform_2, window_bounds = array<i64: 128, 128>}, {pipeline_mode = #tpu.pipeline_mode<synchronous>, transform_indices = @transform_3, window_bounds = array<i64: 1, 128>}, {pipeline_mode = #tpu.pipeline_mode<synchronous>, transform_indices = @transform_4, window_bounds = array<i64: 128, 128>}, {pipeline_mode = #tpu.pipeline_mode<synchronous>, transform_indices = @transform_5, window_bounds = array<i64: 128, 128>}, {pipeline_mode = #tpu.pipeline_mode<synchronous>, transform_indices = @transform_6, window_bounds = array<i64: 1, 128>}, {pipeline_mode = #tpu.pipeline_mode<synchronous>, transform_indices = @transform_7, window_bounds = array<i64: 128, 128>}, {pipeline_mode = #tpu.pipeline_mode<synchronous>, transform_indices = @transform_8, window_bounds = array<i64: 1, 128>}, {transform_indices = @transform_9, window_bounds = array<i64: 8, 128>}]} {
    %c0 = arith.constant 0 : index
    %c0_0 = arith.constant 0 : index
    %0 = vector.load %arg2[%c0, %c0_0] : memref<16x128xf32, #tpu.memory_space<vmem>>, vector<16x128xf32>
    %c0_1 = arith.constant 0 : index
    %c0_2 = arith.constant 0 : index
    %1 = vector.load %arg3[%c0_1, %c0_2] : memref<128x128xf32, #tpu.memory_space<vmem>>, vector<128x128xf32>
    %c0_3 = arith.constant 0 : index
    %c0_4 = arith.constant 0 : index
    %2 = vector.load %arg4[%c0_3, %c0_4] : memref<1x128xf32, #tpu.memory_space<vmem>>, vector<1x128xf32>
    %c0_i32 = arith.constant 0 : i32
    %c8_i32 = arith.constant 8 : i32
    %3 = arith.muli %c0_i32, %c8_i32 : i32
    %4 = tpu.assume_multiple %3, 8 : i32
    %5 = arith.index_cast %4 : i32 to index
    %c0_5 = arith.constant 0 : index
    %c0_6 = arith.constant 0 : index
    %6 = vector.load %arg1[%5, %c0_5, %c0_6] : memref<8x8x16xf32, #tpu.memory_space<vmem>>, vector<8x8x16xf32>
    %7 = vector.shape_cast %6 : vector<8x8x16xf32> to vector<64x16xf32>
    %cst = arith.constant dense<0.000000e+00> : vector<64x128xf32>
    %8 = tpu.matmul %7, %0, %cst {dimension_numbers = #tpu.dot_dimension_numbers<[1], [0], [0], [1], [0, 0, 1, 1], [], []>} : vector<64x16xf32>, vector<16x128xf32>, vector<64x128xf32> -> vector<64x128xf32>
    %9 = vector.broadcast %2 : vector<1x128xf32> to vector<64x128xf32>
    %10 = arith.addf %8, %9 : vector<64x128xf32>
    %11 = vector.shape_cast %10 : vector<64x128xf32> to vector<8x8x128xf32>
    %12 = arith.index_cast %4 : i32 to index
    %c0_7 = arith.constant 0 : index
    %c0_8 = arith.constant 0 : index
    %13 = vector.load %arg11[%12, %c0_7, %c0_8] : memref<8x8x128xf32, #tpu.memory_space<vmem>>, vector<8x8x128xf32>
    tpu.vector_store %arg11[%12, %c0_7, %c0_8], %11 {strides = array<i32>} : memref<8x8x128xf32, #tpu.memory_space<vmem>>, vector<8x8x128xf32>,
    %c1_i32 = arith.constant 1 : i32
    %cst_9 = arith.constant 0.000000e+00 : f32
    %14 = vector.broadcast %cst_9 : f32 to vector<8x128xf32>
    %c0_i32_10 = arith.constant 0 : i32
    %15 = arith.index_cast %c0_i32_10 : i32 to index
    %c0_11 = arith.constant 0 : index
    %c0_12 = arith.constant 0 : index
    %16 = vector.load %arg11[%15, %c0_11, %c0_12] : memref<8x8x128xf32, #tpu.memory_space<vmem>>, vector<1x8x128xf32>
    %17 = vector.shape_cast %16 : vector<1x8x128xf32> to vector<8x128xf32>
    %cst_13 = arith.constant dense<0.000000e+00> : vector<8x128xf32>
    %18 = tpu.matmul %14, %1, %cst_13 {dimension_numbers = #tpu.dot_dimension_numbers<[1], [0], [0], [1], [0, 0, 1, 1], [], []>} : vector<8x128xf32>, vector<128x128xf32>, vector<8x128xf32> -> vector<8x128xf32>
    %19 = arith.addf %17, %18 : vector<8x128xf32>
    %20 = math.tanh %19 : vector<8x128xf32>
    %21 = arith.index_cast %c0_i32_10 : i32 to index
    %c0_14 = arith.constant 0 : index
    %c0_15 = arith.constant 0 : index
    %22 = vector.load %arg11[%21, %c0_14, %c0_15] : memref<8x8x128xf32, #tpu.memory_space<vmem>>, vector<1x8x128xf32>
    %23 = vector.shape_cast %22 : vector<1x8x128xf32> to vector<8x128xf32>
    %24 = vector.shape_cast %20 : vector<8x128xf32> to vector<1x8x128xf32>
    tpu.vector_store %arg11[%21, %c0_14, %c0_15], %24 {strides = array<i32>} : memref<8x8x128xf32, #tpu.memory_space<vmem>>, vector<1x8x128xf32>,
    %c1_i32_16 = arith.constant 1 : i32
    %25 = arith.index_cast %c1_i32_16 : i32 to index
    %c0_17 = arith.constant 0 : index
    %c0_18 = arith.constant 0 : index
    %26 = vector.load %arg11[%25, %c0_17, %c0_18] : memref<8x8x128xf32, #tpu.memory_space<vmem>>, vector<1x8x128xf32>
    %27 = vector.shape_cast %26 : vector<1x8x128xf32> to vector<8x128xf32>
    %cst_19 = arith.constant dense<0.000000e+00> : vector<8x128xf32>
    %28 = tpu.matmul %20, %1, %cst_19 {dimension_numbers = #tpu.dot_dimension_numbers<[1], [0], [0], [1], [0, 0, 1, 1], [], []>} : vector<8x128xf32>, vector<128x128xf32>, vector<8x128xf32> -> vector<8x128xf32>
    %29 = arith.addf %27, %28 : vector<8x128xf32>
    %30 = math.tanh %29 : vector<8x128xf32>
    %31 = arith.index_cast %c1_i32_16 : i32 to index
    %c0_20 = arith.constant 0 : index
    %c0_21 = arith.constant 0 : index
    %32 = vector.load %arg11[%31, %c0_20, %c0_21] : memref<8x8x128xf32, #tpu.memory_space<vmem>>, vector<1x8x128xf32>
    %33 = vector.shape_cast %32 : vector<1x8x128xf32> to vector<8x128xf32>
    %34 = vector.shape_cast %30 : vector<8x128xf32> to vector<1x8x128xf32>
    tpu.vector_store %arg11[%31, %c0_20, %c0_21], %34 {strides = array<i32>} : memref<8x8x128xf32, #tpu.memory_space<vmem>>, vector<1x8x128xf32>,
    %c2_i32 = arith.constant 2 : i32
    %35 = arith.index_cast %c2_i32 : i32 to index
    %c0_22 = arith.constant 0 : index
    %c0_23 = arith.constant 0 : index
    %36 = vector.load %arg11[%35, %c0_22, %c0_23] : memref<8x8x128xf32, #tpu.memory_space<vmem>>, vector<1x8x128xf32>
    %37 = vector.shape_cast %36 : vector<1x8x128xf32> to vector<8x128xf32>
    %cst_24 = arith.constant dense<0.000000e+00> : vector<8x128xf32>
    %38 = tpu.matmul %30, %1, %cst_24 {dimension_numbers = #tpu.dot_dimension_numbers<[1], [0], [0], [1], [0, 0, 1, 1], [], []>} : vector<8x128xf32>, vector<128x128xf32>, vector<8x128xf32> -> vector<8x128xf32>
    %39 = arith.addf %37, %38 : vector<8x128xf32>
    %40 = math.tanh %39 : vector<8x128xf32>
    %41 = arith.index_cast %c2_i32 : i32 to index
    %c0_25 = arith.constant 0 : index
    %c0_26 = arith.constant 0 : index
    %42 = vector.load %arg11[%41, %c0_25, %c0_26] : memref<8x8x128xf32, #tpu.memory_space<vmem>>, vector<1x8x128xf32>
    %43 = vector.shape_cast %42 : vector<1x8x128xf32> to vector<8x128xf32>
    %44 = vector.shape_cast %40 : vector<8x128xf32> to vector<1x8x128xf32>
    tpu.vector_store %arg11[%41, %c0_25, %c0_26], %44 {strides = array<i32>} : memref<8x8x128xf32, #tpu.memory_space<vmem>>, vector<1x8x128xf32>,
    %c3_i32 = arith.constant 3 : i32
    %45 = arith.index_cast %c3_i32 : i32 to index
    %c0_27 = arith.constant 0 : index
    %c0_28 = arith.constant 0 : index
    %46 = vector.load %arg11[%45, %c0_27, %c0_28] : memref<8x8x128xf32, #tpu.memory_space<vmem>>, vector<1x8x128xf32>
    %47 = vector.shape_cast %46 : vector<1x8x128xf32> to vector<8x128xf32>
    %cst_29 = arith.constant dense<0.000000e+00> : vector<8x128xf32>
    %48 = tpu.matmul %40, %1, %cst_29 {dimension_numbers = #tpu.dot_dimension_numbers<[1], [0], [0], [1], [0, 0, 1, 1], [], []>} : vector<8x128xf32>, vector<128x128xf32>, vector<8x128xf32> -> vector<8x128xf32>
    %49 = arith.addf %47, %48 : vector<8x128xf32>
    %50 = math.tanh %49 : vector<8x128xf32>
    %51 = arith.index_cast %c3_i32 : i32 to index
    %c0_30 = arith.constant 0 : index
    %c0_31 = arith.constant 0 : index
    %52 = vector.load %arg11[%51, %c0_30, %c0_31] : memref<8x8x128xf32, #tpu.memory_space<vmem>>, vector<1x8x128xf32>
    %53 = vector.shape_cast %52 : vector<1x8x128xf32> to vector<8x128xf32>
    %54 = vector.shape_cast %50 : vector<8x128xf32> to vector<1x8x128xf32>
    tpu.vector_store %arg11[%51, %c0_30, %c0_31], %54 {strides = array<i32>} : memref<8x8x128xf32, #tpu.memory_space<vmem>>, vector<1x8x128xf32>,
    %c4_i32 = arith.constant 4 : i32
    %55 = arith.index_cast %c4_i32 : i32 to index
    %c0_32 = arith.constant 0 : index
    %c0_33 = arith.constant 0 : index
    %56 = vector.load %arg11[%55, %c0_32, %c0_33] : memref<8x8x128xf32, #tpu.memory_space<vmem>>, vector<1x8x128xf32>
    %57 = vector.shape_cast %56 : vector<1x8x128xf32> to vector<8x128xf32>
    %cst_34 = arith.constant dense<0.000000e+00> : vector<8x128xf32>
    %58 = tpu.matmul %50, %1, %cst_34 {dimension_numbers = #tpu.dot_dimension_numbers<[1], [0], [0], [1], [0, 0, 1, 1], [], []>} : vector<8x128xf32>, vector<128x128xf32>, vector<8x128xf32> -> vector<8x128xf32>
    %59 = arith.addf %57, %58 : vector<8x128xf32>
    %60 = math.tanh %59 : vector<8x128xf32>
    %61 = arith.index_cast %c4_i32 : i32 to index
    %c0_35 = arith.constant 0 : index
    %c0_36 = arith.constant 0 : index
    %62 = vector.load %arg11[%61, %c0_35, %c0_36] : memref<8x8x128xf32, #tpu.memory_space<vmem>>, vector<1x8x128xf32>
    %63 = vector.shape_cast %62 : vector<1x8x128xf32> to vector<8x128xf32>
    %64 = vector.shape_cast %60 : vector<8x128xf32> to vector<1x8x128xf32>
    tpu.vector_store %arg11[%61, %c0_35, %c0_36], %64 {strides = array<i32>} : memref<8x8x128xf32, #tpu.memory_space<vmem>>, vector<1x8x128xf32>,
    %c5_i32 = arith.constant 5 : i32
    %65 = arith.index_cast %c5_i32 : i32 to index
    %c0_37 = arith.constant 0 : index
    %c0_38 = arith.constant 0 : index
    %66 = vector.load %arg11[%65, %c0_37, %c0_38] : memref<8x8x128xf32, #tpu.memory_space<vmem>>, vector<1x8x128xf32>
    %67 = vector.shape_cast %66 : vector<1x8x128xf32> to vector<8x128xf32>
    %cst_39 = arith.constant dense<0.000000e+00> : vector<8x128xf32>
    %68 = tpu.matmul %60, %1, %cst_39 {dimension_numbers = #tpu.dot_dimension_numbers<[1], [0], [0], [1], [0, 0, 1, 1], [], []>} : vector<8x128xf32>, vector<128x128xf32>, vector<8x128xf32> -> vector<8x128xf32>
    %69 = arith.addf %67, %68 : vector<8x128xf32>
    %70 = math.tanh %69 : vector<8x128xf32>
    %71 = arith.index_cast %c5_i32 : i32 to index
    %c0_40 = arith.constant 0 : index
    %c0_41 = arith.constant 0 : index
    %72 = vector.load %arg11[%71, %c0_40, %c0_41] : memref<8x8x128xf32, #tpu.memory_space<vmem>>, vector<1x8x128xf32>
    %73 = vector.shape_cast %72 : vector<1x8x128xf32> to vector<8x128xf32>
    %74 = vector.shape_cast %70 : vector<8x128xf32> to vector<1x8x128xf32>
    tpu.vector_store %arg11[%71, %c0_40, %c0_41], %74 {strides = array<i32>} : memref<8x8x128xf32, #tpu.memory_space<vmem>>, vector<1x8x128xf32>,
    %c6_i32 = arith.constant 6 : i32
    %75 = arith.index_cast %c6_i32 : i32 to index
    %c0_42 = arith.constant 0 : index
    %c0_43 = arith.constant 0 : index
    %76 = vector.load %arg11[%75, %c0_42, %c0_43] : memref<8x8x128xf32, #tpu.memory_space<vmem>>, vector<1x8x128xf32>
    %77 = vector.shape_cast %76 : vector<1x8x128xf32> to vector<8x128xf32>
    %cst_44 = arith.constant dense<0.000000e+00> : vector<8x128xf32>
    %78 = tpu.matmul %70, %1, %cst_44 {dimension_numbers = #tpu.dot_dimension_numbers<[1], [0], [0], [1], [0, 0, 1, 1], [], []>} : vector<8x128xf32>, vector<128x128xf32>, vector<8x128xf32> -> vector<8x128xf32>
    %79 = arith.addf %77, %78 : vector<8x128xf32>
    %80 = math.tanh %79 : vector<8x128xf32>
    %81 = arith.index_cast %c6_i32 : i32 to index
    %c0_45 = arith.constant 0 : index
    %c0_46 = arith.constant 0 : index
    %82 = vector.load %arg11[%81, %c0_45, %c0_46] : memref<8x8x128xf32, #tpu.memory_space<vmem>>, vector<1x8x128xf32>
    %83 = vector.shape_cast %82 : vector<1x8x128xf32> to vector<8x128xf32>
    %84 = vector.shape_cast %80 : vector<8x128xf32> to vector<1x8x128xf32>
    tpu.vector_store %arg11[%81, %c0_45, %c0_46], %84 {strides = array<i32>} : memref<8x8x128xf32, #tpu.memory_space<vmem>>, vector<1x8x128xf32>,
    %c7_i32 = arith.constant 7 : i32
    %85 = arith.index_cast %c7_i32 : i32 to index
    %c0_47 = arith.constant 0 : index
    %c0_48 = arith.constant 0 : index
    %86 = vector.load %arg11[%85, %c0_47, %c0_48] : memref<8x8x128xf32, #tpu.memory_space<vmem>>, vector<1x8x128xf32>
    %87 = vector.shape_cast %86 : vector<1x8x128xf32> to vector<8x128xf32>
    %cst_49 = arith.constant dense<0.000000e+00> : vector<8x128xf32>
    %88 = tpu.matmul %80, %1, %cst_49 {dimension_numbers = #tpu.dot_dimension_numbers<[1], [0], [0], [1], [0, 0, 1, 1], [], []>} : vector<8x128xf32>, vector<128x128xf32>, vector<8x128xf32> -> vector<8x128xf32>
    %89 = arith.addf %87, %88 : vector<8x128xf32>
    %90 = math.tanh %89 : vector<8x128xf32>
    %91 = arith.index_cast %c7_i32 : i32 to index
    %c0_50 = arith.constant 0 : index
    %c0_51 = arith.constant 0 : index
    %92 = vector.load %arg11[%91, %c0_50, %c0_51] : memref<8x8x128xf32, #tpu.memory_space<vmem>>, vector<1x8x128xf32>
    %93 = vector.shape_cast %92 : vector<1x8x128xf32> to vector<8x128xf32>
    %94 = vector.shape_cast %90 : vector<8x128xf32> to vector<1x8x128xf32>
    tpu.vector_store %arg11[%91, %c0_50, %c0_51], %94 {strides = array<i32>} : memref<8x8x128xf32, #tpu.memory_space<vmem>>, vector<1x8x128xf32>,
    %c8_i32_52 = arith.constant 8 : i32
    %c0_53 = arith.constant 0 : index
    %c0_54 = arith.constant 0 : index
    %95 = vector.load %arg5[%c0_53, %c0_54] : memref<128x128xf32, #tpu.memory_space<vmem>>, vector<128x128xf32>
    %c0_55 = arith.constant 0 : index
    %c0_56 = arith.constant 0 : index
    %96 = vector.load %arg6[%c0_55, %c0_56] : memref<128x128xf32, #tpu.memory_space<vmem>>, vector<128x128xf32>
    %c0_57 = arith.constant 0 : index
    %c0_58 = arith.constant 0 : index
    %97 = vector.load %arg7[%c0_57, %c0_58] : memref<1x128xf32, #tpu.memory_space<vmem>>, vector<1x128xf32>
    %c0_i32_59 = arith.constant 0 : i32
    %c8_i32_60 = arith.constant 8 : i32
    %98 = arith.muli %c0_i32_59, %c8_i32_60 : i32
    %99 = tpu.assume_multiple %98, 8 : i32
    %100 = arith.index_cast %99 : i32 to index
    %c0_61 = arith.constant 0 : index
    %c0_62 = arith.constant 0 : index
    %101 = vector.load %arg11[%100, %c0_61, %c0_62] : memref<8x8x128xf32, #tpu.memory_space<vmem>>, vector<8x8x128xf32>
    %102 = vector.shape_cast %101 : vector<8x8x128xf32> to vector<64x128xf32>
    %cst_63 = arith.constant dense<0.000000e+00> : vector<64x128xf32>
    %103 = tpu.matmul %102, %95, %cst_63 {dimension_numbers = #tpu.dot_dimension_numbers<[1], [0], [0], [1], [0, 0, 1, 1], [], []>} : vector<64x128xf32>, vector<128x128xf32>, vector<64x128xf32> -> vector<64x128xf32>
    %104 = vector.broadcast %97 : vector<1x128xf32> to vector<64x128xf32>
    %105 = arith.addf %103, %104 : vector<64x128xf32>
    %106 = vector.shape_cast %105 : vector<64x128xf32> to vector<8x8x128xf32>
    %107 = arith.index_cast %99 : i32 to index
    %c0_64 = arith.constant 0 : index
    %c0_65 = arith.constant 0 : index
    %108 = vector.load %arg11[%107, %c0_64, %c0_65] : memref<8x8x128xf32, #tpu.memory_space<vmem>>, vector<8x8x128xf32>
    tpu.vector_store %arg11[%107, %c0_64, %c0_65], %106 {strides = array<i32>} : memref<8x8x128xf32, #tpu.memory_space<vmem>>, vector<8x8x128xf32>,
    %c1_i32_66 = arith.constant 1 : i32
    %cst_67 = arith.constant 0.000000e+00 : f32
    %109 = vector.broadcast %cst_67 : f32 to vector<8x128xf32>
    %c0_i32_68 = arith.constant 0 : i32
    %110 = arith.index_cast %c0_i32_68 : i32 to index
    %c0_69 = arith.constant 0 : index
    %c0_70 = arith.constant 0 : index
    %111 = vector.load %arg11[%110, %c0_69, %c0_70] : memref<8x8x128xf32, #tpu.memory_space<vmem>>, vector<1x8x128xf32>
    %112 = vector.shape_cast %111 : vector<1x8x128xf32> to vector<8x128xf32>
    %cst_71 = arith.constant dense<0.000000e+00> : vector<8x128xf32>
    %113 = tpu.matmul %109, %96, %cst_71 {dimension_numbers = #tpu.dot_dimension_numbers<[1], [0], [0], [1], [0, 0, 1, 1], [], []>} : vector<8x128xf32>, vector<128x128xf32>, vector<8x128xf32> -> vector<8x128xf32>
    %114 = arith.addf %112, %113 : vector<8x128xf32>
    %115 = math.tanh %114 : vector<8x128xf32>
    %c1_i32_72 = arith.constant 1 : i32
    %116 = arith.index_cast %c1_i32_72 : i32 to index
    %c0_73 = arith.constant 0 : index
    %c0_74 = arith.constant 0 : index
    %117 = vector.load %arg11[%116, %c0_73, %c0_74] : memref<8x8x128xf32, #tpu.memory_space<vmem>>, vector<1x8x128xf32>
    %118 = vector.shape_cast %117 : vector<1x8x128xf32> to vector<8x128xf32>
    %cst_75 = arith.constant dense<0.000000e+00> : vector<8x128xf32>
    %119 = tpu.matmul %115, %96, %cst_75 {dimension_numbers = #tpu.dot_dimension_numbers<[1], [0], [0], [1], [0, 0, 1, 1], [], []>} : vector<8x128xf32>, vector<128x128xf32>, vector<8x128xf32> -> vector<8x128xf32>
    %120 = arith.addf %118, %119 : vector<8x128xf32>
    %121 = math.tanh %120 : vector<8x128xf32>
    %c2_i32_76 = arith.constant 2 : i32
    %122 = arith.index_cast %c2_i32_76 : i32 to index
    %c0_77 = arith.constant 0 : index
    %c0_78 = arith.constant 0 : index
    %123 = vector.load %arg11[%122, %c0_77, %c0_78] : memref<8x8x128xf32, #tpu.memory_space<vmem>>, vector<1x8x128xf32>
    %124 = vector.shape_cast %123 : vector<1x8x128xf32> to vector<8x128xf32>
    %cst_79 = arith.constant dense<0.000000e+00> : vector<8x128xf32>
    %125 = tpu.matmul %121, %96, %cst_79 {dimension_numbers = #tpu.dot_dimension_numbers<[1], [0], [0], [1], [0, 0, 1, 1], [], []>} : vector<8x128xf32>, vector<128x128xf32>, vector<8x128xf32> -> vector<8x128xf32>
    %126 = arith.addf %124, %125 : vector<8x128xf32>
    %127 = math.tanh %126 : vector<8x128xf32>
    %c3_i32_80 = arith.constant 3 : i32
    %128 = arith.index_cast %c3_i32_80 : i32 to index
    %c0_81 = arith.constant 0 : index
    %c0_82 = arith.constant 0 : index
    %129 = vector.load %arg11[%128, %c0_81, %c0_82] : memref<8x8x128xf32, #tpu.memory_space<vmem>>, vector<1x8x128xf32>
    %130 = vector.shape_cast %129 : vector<1x8x128xf32> to vector<8x128xf32>
    %cst_83 = arith.constant dense<0.000000e+00> : vector<8x128xf32>
    %131 = tpu.matmul %127, %96, %cst_83 {dimension_numbers = #tpu.dot_dimension_numbers<[1], [0], [0], [1], [0, 0, 1, 1], [], []>} : vector<8x128xf32>, vector<128x128xf32>, vector<8x128xf32> -> vector<8x128xf32>
    %132 = arith.addf %130, %131 : vector<8x128xf32>
    %133 = math.tanh %132 : vector<8x128xf32>
    %c4_i32_84 = arith.constant 4 : i32
    %134 = arith.index_cast %c4_i32_84 : i32 to index
    %c0_85 = arith.constant 0 : index
    %c0_86 = arith.constant 0 : index
    %135 = vector.load %arg11[%134, %c0_85, %c0_86] : memref<8x8x128xf32, #tpu.memory_space<vmem>>, vector<1x8x128xf32>
    %136 = vector.shape_cast %135 : vector<1x8x128xf32> to vector<8x128xf32>
    %cst_87 = arith.constant dense<0.000000e+00> : vector<8x128xf32>
    %137 = tpu.matmul %133, %96, %cst_87 {dimension_numbers = #tpu.dot_dimension_numbers<[1], [0], [0], [1], [0, 0, 1, 1], [], []>} : vector<8x128xf32>, vector<128x128xf32>, vector<8x128xf32> -> vector<8x128xf32>
    %138 = arith.addf %136, %137 : vector<8x128xf32>
    %139 = math.tanh %138 : vector<8x128xf32>
    %c5_i32_88 = arith.constant 5 : i32
    %140 = arith.index_cast %c5_i32_88 : i32 to index
    %c0_89 = arith.constant 0 : index
    %c0_90 = arith.constant 0 : index
    %141 = vector.load %arg11[%140, %c0_89, %c0_90] : memref<8x8x128xf32, #tpu.memory_space<vmem>>, vector<1x8x128xf32>
    %142 = vector.shape_cast %141 : vector<1x8x128xf32> to vector<8x128xf32>
    %cst_91 = arith.constant dense<0.000000e+00> : vector<8x128xf32>
    %143 = tpu.matmul %139, %96, %cst_91 {dimension_numbers = #tpu.dot_dimension_numbers<[1], [0], [0], [1], [0, 0, 1, 1], [], []>} : vector<8x128xf32>, vector<128x128xf32>, vector<8x128xf32> -> vector<8x128xf32>
    %144 = arith.addf %142, %143 : vector<8x128xf32>
    %145 = math.tanh %144 : vector<8x128xf32>
    %c6_i32_92 = arith.constant 6 : i32
    %146 = arith.index_cast %c6_i32_92 : i32 to index
    %c0_93 = arith.constant 0 : index
    %c0_94 = arith.constant 0 : index
    %147 = vector.load %arg11[%146, %c0_93, %c0_94] : memref<8x8x128xf32, #tpu.memory_space<vmem>>, vector<1x8x128xf32>
    %148 = vector.shape_cast %147 : vector<1x8x128xf32> to vector<8x128xf32>
    %cst_95 = arith.constant dense<0.000000e+00> : vector<8x128xf32>
    %149 = tpu.matmul %145, %96, %cst_95 {dimension_numbers = #tpu.dot_dimension_numbers<[1], [0], [0], [1], [0, 0, 1, 1], [], []>} : vector<8x128xf32>, vector<128x128xf32>, vector<8x128xf32> -> vector<8x128xf32>
    %150 = arith.addf %148, %149 : vector<8x128xf32>
    %151 = math.tanh %150 : vector<8x128xf32>
    %c7_i32_96 = arith.constant 7 : i32
    %152 = arith.index_cast %c7_i32_96 : i32 to index
    %c0_97 = arith.constant 0 : index
    %c0_98 = arith.constant 0 : index
    %153 = vector.load %arg11[%152, %c0_97, %c0_98] : memref<8x8x128xf32, #tpu.memory_space<vmem>>, vector<1x8x128xf32>
    %154 = vector.shape_cast %153 : vector<1x8x128xf32> to vector<8x128xf32>
    %cst_99 = arith.constant dense<0.000000e+00> : vector<8x128xf32>
    %155 = tpu.matmul %151, %96, %cst_99 {dimension_numbers = #tpu.dot_dimension_numbers<[1], [0], [0], [1], [0, 0, 1, 1], [], []>} : vector<8x128xf32>, vector<128x128xf32>, vector<8x128xf32> -> vector<8x128xf32>
    %156 = arith.addf %154, %155 : vector<8x128xf32>
    %157 = math.tanh %156 : vector<8x128xf32>
    %c8_i32_100 = arith.constant 8 : i32
    %c0_101 = arith.constant 0 : index
    %c0_102 = arith.constant 0 : index
    %158 = vector.load %arg8[%c0_101, %c0_102] : memref<128x128xf32, #tpu.memory_space<vmem>>, vector<128x128xf32>
    %c0_103 = arith.constant 0 : index
    %c0_104 = arith.constant 0 : index
    %159 = vector.load %arg9[%c0_103, %c0_104] : memref<1x128xf32, #tpu.memory_space<vmem>>, vector<1x128xf32>
    %cst_105 = arith.constant dense<0.000000e+00> : vector<8x128xf32>
    %160 = tpu.matmul %157, %158, %cst_105 {dimension_numbers = #tpu.dot_dimension_numbers<[1], [0], [0], [1], [0, 0, 1, 1], [], []>} : vector<8x128xf32>, vector<128x128xf32>, vector<8x128xf32> -> vector<8x128xf32>
    %161 = vector.broadcast %159 : vector<1x128xf32> to vector<8x128xf32>
    %162 = arith.addf %160, %161 : vector<8x128xf32>
    %c0_106 = arith.constant 0 : index
    %c0_107 = arith.constant 0 : index
    %163 = vector.load %arg10[%c0_106, %c0_107] : memref<8x128xf32, #tpu.memory_space<vmem>>, vector<8x128xf32>
    tpu.vector_store %arg10[%c0_106, %c0_107], %162 {strides = array<i32>} : memref<8x128xf32, #tpu.memory_space<vmem>>, vector<8x128xf32>,
    return
  }
  func.func @transform_0(%arg0: i32) -> (i32, i32, i32) {
    %c0_i32 = arith.constant 0 : i32
    %c0_i32_0 = arith.constant 0 : i32
    %c0_i32_1 = arith.constant 0 : i32
    return %c0_i32, %arg0, %c0_i32_0 : i32, i32, i32
  }
  func.func @transform_1(%arg0: i32) -> (i32, i32) {
    %c0_i32 = arith.constant 0 : i32
    %c0_i32_0 = arith.constant 0 : i32
    %c0_i32_1 = arith.constant 0 : i32
    return %c0_i32, %c0_i32_0 : i32, i32
  }
  func.func @transform_2(%arg0: i32) -> (i32, i32) {
    %c0_i32 = arith.constant 0 : i32
    %c0_i32_0 = arith.constant 0 : i32
    %c0_i32_1 = arith.constant 0 : i32
    return %c0_i32, %c0_i32_0 : i32, i32
  }
  func.func @transform_3(%arg0: i32) -> (i32, i32) {
    %c0_i32 = arith.constant 0 : i32
    %c0_i32_0 = arith.constant 0 : i32
    %c0_i32_1 = arith.constant 0 : i32
    return %c0_i32, %c0_i32_0 : i32, i32
  }
  func.func @transform_4(%arg0: i32) -> (i32, i32) {
    %c0_i32 = arith.constant 0 : i32
    %c0_i32_0 = arith.constant 0 : i32
    %c0_i32_1 = arith.constant 0 : i32
    return %c0_i32, %c0_i32_0 : i32, i32
  }
  func.func @transform_5(%arg0: i32) -> (i32, i32) {
    %c0_i32 = arith.constant 0 : i32
    %c0_i32_0 = arith.constant 0 : i32
    %c0_i32_1 = arith.constant 0 : i32
    return %c0_i32, %c0_i32_0 : i32, i32
  }
  func.func @transform_6(%arg0: i32) -> (i32, i32) {
    %c0_i32 = arith.constant 0 : i32
    %c0_i32_0 = arith.constant 0 : i32
    %c0_i32_1 = arith.constant 0 : i32
    return %c0_i32, %c0_i32_0 : i32, i32
  }
  func.func @transform_7(%arg0: i32) -> (i32, i32) {
    %c0_i32 = arith.constant 0 : i32
    %c0_i32_0 = arith.constant 0 : i32
    %c0_i32_1 = arith.constant 0 : i32
    return %c0_i32, %c0_i32_0 : i32, i32
  }
  func.func @transform_8(%arg0: i32) -> (i32, i32) {
    %c0_i32 = arith.constant 0 : i32
    %c0_i32_0 = arith.constant 0 : i32
    %c0_i32_1 = arith.constant 0 : i32
    return %c0_i32, %c0_i32_0 : i32, i32
  }
  func.func @transform_9(%arg0: i32) -> (i32, i32) {
    %c0_i32 = arith.constant 0 : i32
    %c0_i32_0 = arith.constant 0 : i32
    return %arg0, %c0_i32 : i32, i32
  }
}

</mosaic_0001>

<bundles_post_ra>
// kernel: tpu_custom_call.1
= control target key start
LH: loop header
LB: loop body
LE: loop exit
PB: predicated region body
PF: predicated region fallthrough
CT: control target
= control target key end

     0   :  { %14 = vsyncpa [#allocation4], 0  ;;  %s3992_s0 = inlined_call_operand.hbm [shape: f32[8,8,16], index: 0, kind: input, shape index: {}]   ;;  %s3993_s1 = inlined_call_operand.hbm [shape: f32[16,128], index: 1, kind: input, shape index: {}]   ;;  %s3994_s2 = inlined_call_operand.hbm [shape: f32[128,128], index: 2, kind: input, shape index: {}]   ;;  %s3995_s3 = inlined_call_operand.vmem [shape: f32[1,128], index: 3, kind: input, shape index: {}]   ;;  %s3996_s4 = inlined_call_operand.hbm [shape: f32[128,128], index: 4, kind: input, shape index: {}]   ;;  %s3997_s5 = inlined_call_operand.hbm [shape: f32[128,128], index: 5, kind: input, shape index: {}]   ;;  %s3998_s6 = inlined_call_operand.vmem [shape: f32[1,128], index: 6, kind: input, shape index: {}]   ;;  %s3999_s7 = inlined_call_operand.hbm [shape: f32[128,128], index: 7, kind: input, shape index: {}]   ;;  %s4000_s8 = inlined_call_operand.vmem [shape: f32[1,128], index: 8, kind: input, shape index: {}]   ;;  %s4001_s9 = inlined_call_operand.hbm [shape: f32[8,128], index: 9, kind: output, shape index: {}]  }
   0x1   :  { %15 = vsyncpa [#allocation7], 0 }
   0x2   :  { %16 = vsyncpa [#allocation10], 0 }
   0x3   :  { %17 = vsyncpa [#allocation13], 0 }
   0x4   :  { %18 = vsyncpa [#allocation5], 0  ;;  %s3385_s30 = smov [#allocation6]   ;;  %s3386_s11 = smov [#allocation9]  }
   0x5   :  { %s36_s10 = sshll.u32 %s3385_s30, 4  ;;  %s62_s12 = sshll.u32 %s3386_s11, 4  ;;  %s37_s10 = int_to_ptr.vmem [resolvable:$true] %s36_s10  ;;  %s3447_s12 = int_to_ptr.vmem [resolvable:$true] %s62_s12 }
   0x6   :  { %s3221_s15 = scalar_lea.hbm %s3993_s1, 256 }
   0x7   :  { %p3222_p0 = scmp.ne.s32.totalorder %s3993_s1, %s3221_s15  ;;  %p3225_p1 = scmp.lt.u32.totalorder %s3221_s15, %s3993_s1 }
   0x9   :  { %p3227_p2 = pnand %p3225_p1, %p3222_p0 }
   0xb   :  { %3230 = shalt.err (!%p3227_p2)
}
   0xc   :  { %s3231_s20 = scalar_lea.vmem %s37_s10, 256  ;;  %p3236_p4 = scmp.lt.s32.totalorder %s37_s10, %s37_s10 }
   0xd   :  { %p3232_p3 = scmp.ne.s32.totalorder %s37_s10, %s3231_s20  ;;  %p3237_p5 = scmp.lt.s32.totalorder %s3231_s20, %s3231_s20 }
   0xf   :  { %p3238_p6 = por %p3237_p5, %p3236_p4 }
  0x11   :  { %p3239_p7 = pnand %p3238_p6, %p3232_p3 }
  0x13   :  { %3242 = shalt.err (!%p3239_p7)
}
  0x14   :  { %s3387_s21 = smov 128   ;;  %s3388_s22 = smov 8  }
  0x15   :  { %42 = dma.hbm_to_vmem [thread:$0]  %s3993_s1, 256, %s37_s10, [#allocation7], %s3387_s21, %s3387_s21, %s3388_s22  }
  0x16   :  { %s3243_s27 = scalar_lea.hbm %s3996_s4, 2048 }
  0x17   :  { %p3244_p8 = scmp.ne.s32.totalorder %s3996_s4, %s3243_s27  ;;  %p3247_p9 = scmp.lt.u32.totalorder %s3243_s27, %s3996_s4 }
  0x19   :  { %p3249_p10 = pnand %p3247_p9, %p3244_p8 }
  0x1b   :  { %3252 = shalt.err (!%p3249_p10)
}
  0x1c   :  { %s3253_s13 = scalar_lea.vmem %s3447_s12, 2048  ;;  %p3258_p12 = scmp.lt.s32.totalorder %s3447_s12, %s3447_s12 }
  0x1d   :  { %p3254_p11 = scmp.ne.s32.totalorder %s3447_s12, %s3253_s13  ;;  %p3259_p13 = scmp.lt.s32.totalorder %s3253_s13, %s3253_s13 }
  0x1f   :  { %p3260_p0 = por %p3259_p13, %p3258_p12 }
  0x21   :  { %p3261_p1 = pnand %p3260_p0, %p3254_p11 }
  0x23   :  { %3264 = shalt.err (!%p3261_p1)
}
  0x24   :  { %68 = dma.hbm_to_vmem [thread:$0]  %s3996_s4, 2048, %s3447_s12, [#allocation10], %s3387_s21, %s3387_s21, %s3388_s22  }
  0x25   :  { %s3389_s14 = smov [#allocation3]   ;;  %s3390_s16 = smov [#allocation8]  }
  0x26   :  { %s24_s15 = sshll.u32 %s3389_s14, 4  ;;  %s48_s17 = sshll.u32 %s3390_s16, 4  ;;  %s25_s15 = int_to_ptr.vmem [resolvable:$true] %s24_s15  ;;  %s3484_s17 = int_to_ptr.vmem [resolvable:$true] %s48_s17 }
  0x27   :  { %s3265_s20 = scalar_lea.hbm %s3992_s0, 1024 }
  0x28   :  { %p3266_p2 = scmp.ne.s32.totalorder %s3992_s0, %s3265_s20  ;;  %p3269_p3 = scmp.lt.u32.totalorder %s3265_s20, %s3992_s0 }
  0x2a   :  { %p3271_p4 = pnand %p3269_p3, %p3266_p2 }
  0x2c   :  { %3274 = shalt.err (!%p3271_p4)
}
  0x2d   :  { %s3275_s4 = scalar_lea.vmem %s25_s15, 1024  ;;  %p3280_p6 = scmp.lt.s32.totalorder %s25_s15, %s25_s15 }
  0x2e   :  { %p3276_p5 = scmp.ne.s32.totalorder %s25_s15, %s3275_s4  ;;  %p3281_p7 = scmp.lt.s32.totalorder %s3275_s4, %s3275_s4 }
  0x30   :  { %p3282_p8 = por %p3281_p7, %p3280_p6 }
  0x32   :  { %p3283_p9 = pnand %p3282_p8, %p3276_p5 }
  0x34   :  { %3286 = shalt.err (!%p3283_p9)
}
  0x35   :  { %30 = dma.hbm_to_vmem [thread:$0]  %s3992_s0, 1024, %s25_s15, [#allocation4], %s3387_s21, %s3387_s21, %s3388_s22  }
  0x36   :  { %s3287_s30 = scalar_lea.hbm %s3994_s2, 2048 }
  0x37   :  { %p3288_p10 = scmp.ne.s32.totalorder %s3994_s2, %s3287_s30  ;;  %p3291_p11 = scmp.lt.u32.totalorder %s3287_s30, %s3994_s2 }
  0x39   :  { %p3293_p12 = pnand %p3291_p11, %p3288_p10 }
  0x3b   :  { %3296 = shalt.err (!%p3293_p12)
}
  0x3c   :  { %s3297_s14 = scalar_lea.vmem %s3484_s17, 2048  ;;  %p3302_p0 = scmp.lt.s32.totalorder %s3484_s17, %s3484_s17 }
  0x3d   :  { %p3298_p13 = scmp.ne.s32.totalorder %s3484_s17, %s3297_s14  ;;  %p3303_p1 = scmp.lt.s32.totalorder %s3297_s14, %s3297_s14 }
  0x3f   :  { %p3304_p2 = por %p3303_p1, %p3302_p0 }
  0x41   :  { %p3305_p3 = pnand %p3304_p2, %p3298_p13 }
  0x43   :  { %3308 = shalt.err (!%p3305_p3)
}
  0x44   :  { %54 = dma.hbm_to_vmem [thread:$0]  %s3994_s2, 2048, %s3484_s17, [#allocation7], %s3387_s21, %s3387_s21, %s3388_s22  }
  0x45   :  { %s3391_s16 = smov [#allocation11]   ;;  %s3392_s19 = smov [#allocation12]  }
  0x46   :  { %s74_s18 = sshll.u32 %s3391_s16, 4  ;;  %s88_s20 = sshll.u32 %s3392_s19, 4  ;;  %s75_s18 = int_to_ptr.vmem [resolvable:$true] %s74_s18  ;;  %s3521_s20 = int_to_ptr.vmem [resolvable:$true] %s88_s20 }
  0x47   :  { %s3309_s25 = scalar_lea.hbm %s3997_s5, 2048 }
  0x48   :  { %p3310_p4 = scmp.ne.s32.totalorder %s3997_s5, %s3309_s25  ;;  %p3313_p5 = scmp.lt.u32.totalorder %s3309_s25, %s3997_s5 }
  0x4a   :  { %p3315_p6 = pnand %p3313_p5, %p3310_p4 }
  0x4c   :  { %3318 = shalt.err (!%p3315_p6)
}
  0x4d   :  { %s3319_s2 = scalar_lea.vmem %s75_s18, 2048  ;;  %p3324_p8 = scmp.lt.s32.totalorder %s75_s18, %s75_s18 }
  0x4e   :  { %p3320_p7 = scmp.ne.s32.totalorder %s75_s18, %s3319_s2  ;;  %p3325_p9 = scmp.lt.s32.totalorder %s3319_s2, %s3319_s2 }
  0x50   :  { %p3326_p10 = por %p3325_p9, %p3324_p8 }
  0x52   :  { %p3327_p11 = pnand %p3326_p10, %p3320_p7 }
  0x54   :  { %3330 = shalt.err (!%p3327_p11)
}
  0x55   :  { %80 = dma.hbm_to_vmem [thread:$0]  %s3997_s5, 2048, %s75_s18, [#allocation10], %s3387_s21, %s3387_s21, %s3388_s22  }
  0x56   :  { %s3331_s11 = scalar_lea.hbm %s3999_s7, 2048 }
  0x57   :  { %p3332_p12 = scmp.ne.s32.totalorder %s3999_s7, %s3331_s11  ;;  %p3335_p13 = scmp.lt.u32.totalorder %s3331_s11, %s3999_s7 }
  0x59   :  { %p3337_p0 = pnand %p3335_p13, %p3332_p12 }
  0x5b   :  { %3340 = shalt.err (!%p3337_p0)
}
  0x5c   :  { %s3341_s0 = scalar_lea.vmem %s3521_s20, 2048  ;;  %p3346_p2 = scmp.lt.s32.totalorder %s3521_s20, %s3521_s20 }
  0x5d   :  { %p3342_p1 = scmp.ne.s32.totalorder %s3521_s20, %s3341_s0  ;;  %p3347_p3 = scmp.lt.s32.totalorder %s3341_s0, %s3341_s0 }
  0x5f   :  { %p3348_p4 = por %p3347_p3, %p3346_p2 }
  0x61   :  { %p3349_p5 = pnand %p3348_p4, %p3342_p1 }
  0x63   :  { %3352 = shalt.err (!%p3349_p5)
}
  0x64   :  { %94 = dma.hbm_to_vmem [thread:$0]  %s3999_s7, 2048, %s3521_s20, [#allocation13], %s3387_s21, %s3387_s21, %s3388_s22  }
  0x65   :  { %3375 = dma.done.wait [#allocation4], 1024  }
  0x66   :  { %3376 = vsyncadd [#allocation4], 4294966272 }
  0x67   :  { %3377 = dma.done.wait [#allocation7], 2304  }
  0x68   :  { %3378 = vsyncadd [#allocation7], 4294964992 }
  0x69   :  { %3379 = dma.done.wait [#allocation10], 4096  }
  0x6a   :  { %3380 = vsyncadd [#allocation10], 4294963200 }
  0x6b   :  { %3381 = dma.done.wait [#allocation13], 2048  }
  0x6c   :  { %3382 = vsyncadd [#allocation13], 4294965248  ;;  %v3393_v0 = vmov 0.0|0.0   ;;  %vm3394_vm0 = vmmov 0   ;;  %v3395_v1 = vmov 0.0   ;;  %v117_v2 = vld [vmem:[#allocation8] sm:$0xff] }
  0x6d   :  { %2737 = vmatprep.subr.bf16.mxu1 %v3393_v0  ;;  %2126 = vmatprep.mubr.msk.f32.mxu1 %vm3394_vm0, %v3395_v1  ;;  %v118_v3 = vld [vmem:[#allocation8 + $0x8] sm:$0xff]  ;;  %v119_v4 = vld [vmem:[#allocation8 + $0x10] sm:$0xff]  ;;  %v120_v6 = vld [vmem:[#allocation8 + $0x18] sm:$0xff]  ;;  %vm150_vm1 = vcmask 130048   ;;  %s3396_s18 = smov [#allocation14]  }
  0x6e   :  { %v3561_v5 = vpack.c.bf16 %v118_v3, %v117_v2  ;;  %v3564_v7 = vpack.c.bf16 %v120_v6, %v119_v4  ;;  %v121_v8 = vld [vmem:[#allocation8 + $0x20] sm:$0xff]  ;;  %v122_v9 = vld [vmem:[#allocation8 + $0x28] sm:$0xff]  ;;  %v115_v10 = vld [vmem:[#allocation6] sm:$0xff]  ;;  %s1732_s19 = sshll.u32 %s3396_s18, 4  ;;  %s1733_s19 = int_to_ptr.vmem [resolvable:$true] %s1732_s19 }
  0x6f   :  { %v116_v11 = vld [vmem:[#allocation6 + $0x8] sm:$0xff]  ;;  %v136_v13 = vld [vmem:[#allocation3] sm:$0xff]  ;;  %v3569_v14 = vpack.c.bf16 %v122_v9, %v121_v8  ;;  %v125_v19 = vld [vmem:[#allocation8 + $0x40] sm:$0xff]  ;;  %s3353_s20 = scalar_lea.vmem %s1733_s19, 128  ;;  %p3358_p7 = scmp.lt.s32.totalorder %s1733_s19, %s1733_s19 }
  0x70   :  { %2739 = vmatpush3.bf16.msra.mxu1 %v3561_v5  ;;  %v2733_v12 = vpack.c.bf16 %v116_v11, %v115_v10  ;;  %2082 = vmatprep.mubr.msk.f32.mxu0 %vm150_vm1, %v136_v13  ;;  %v123_v15 = vld [vmem:[#allocation8 + $0x30] sm:$0xff]  ;;  %v124_v16 = vld [vmem:[#allocation8 + $0x38] sm:$0xff]  ;;  %v126_v20 = vld [vmem:[#allocation8 + $0x48] sm:$0xff]  ;;  %p3354_p6 = scmp.ne.s32.totalorder %s1733_s19, %s3353_s20  ;;  %p3359_p8 = scmp.lt.s32.totalorder %s3353_s20, %s3353_s20 }
  0x71   :  { %2740 = vmatprep.subr.bf16.mxu1 %v3393_v0  ;;  %v137_v17 = vld [vmem:[#allocation3 + $0x8] sm:$0xff]  ;;  %v3574_v18 = vpack.c.bf16 %v124_v16, %v123_v15  ;;  %v3581_v21 = vpack.c.bf16 %v126_v20, %v125_v19  ;;  %v127_v22 = vld [vmem:[#allocation8 + $0x50] sm:$0xff]  ;;  %v129_v25 = vld [vmem:[#allocation8 + $0x60] sm:$0xff] }
  0x72   :  { %2734 = vmatprep.subr.bf16.mxu0 %v2733_v12  ;;  %v128_v23 = vld [vmem:[#allocation8 + $0x58] sm:$0xff]  ;;  %v130_v26 = vld [vmem:[#allocation8 + $0x68] sm:$0xff]  ;;  %v131_v28 = vld [vmem:[#allocation8 + $0x70] sm:$0xff]  ;;  %p3360_p9 = por %p3359_p8, %p3358_p7 }
  0x73   :  { %2736 = vmatpush3.bf16.msra.mxu0 %v2733_v12  ;;  %v3587_v24 = vpack.c.bf16 %v128_v23, %v127_v22  ;;  %v3593_v27 = vpack.c.bf16 %v130_v26, %v129_v25  ;;  %v132_v29 = vld [vmem:[#allocation8 + $0x78] sm:$0xff]  ;;  %v138_v31 = vld [vmem:[#allocation3 + $0x10] sm:$0xff]  ;;  %v139_v32 = vld [vmem:[#allocation3 + $0x18] sm:$0xff] }
  0x74   :  { %2742 = vmatpush3.bf16.msra.mxu1 %v3564_v7  ;;  %2761 = vmatprep.subr.bf16.mxu0 %v3393_v0  ;;  %v3599_v30 = vpack.c.bf16 %v132_v29, %v131_v28  ;;  %v140_v33 = vld [vmem:[#allocation3 + $0x20] sm:$0xff]  ;;  %v141_v34 = vld [vmem:[#allocation3 + $0x28] sm:$0xff]  ;;  %v142_v35 = vld [vmem:[#allocation3 + $0x30] sm:$0xff]  ;;  %p3361_p10 = pnand %p3360_p9, %p3354_p6 }
  0x75   :  { %2743 = vmatprep.subr.bf16.mxu1 %v3393_v0  ;;  %v143_v36 = vld [vmem:[#allocation3 + $0x38] sm:$0xff]  ;;  %v3642_v39 = vld [vmem:[%s3995_s3] ss:$0 sm:$0xff]  ;;  %v892_v20 = vld [vmem:[#allocation9 + $0x20] sm:$0xff] }
  0x76   :  { %2083 = vmatmul.mubr.msk.f32.vlgmr.msra.gmra.mrb[0].mxu0 %vm150_vm1, %v137_v17  ;;  %v890_v16 = vld [vmem:[#allocation9 + $0x10] sm:$0xff]  ;;  %v891_v17 = vld [vmem:[#allocation9 + $0x18] sm:$0xff]  ;;  %v896_v26 = vld [vmem:[#allocation9 + $0x40] sm:$0xff] }
  0x77   :  { %2763 = vmatpush3.bf16.msra.mxu0 %v3561_v5  ;;  %2085 = vmatprep.mubr.msk.f32.mxu0 %vm150_vm1, %v138_v31  ;;  %v894_v23 = vld [vmem:[#allocation9 + $0x30] sm:$0xff] }
  0x78   :  { %2745 = vmatpush3.bf16.msra.mxu1 %v3569_v14  ;;  %2764 = vmatprep.subr.bf16.mxu0 %v3393_v0  ;;  %v898_v29 = vld [vmem:[#allocation9 + $0x50] sm:$0xff] }
  0x79   :  { %2746 = vmatprep.subr.bf16.mxu1 %v3393_v0 }
  0x7a   :  { %2086 = vmatmul.mubr.msk.f32.gmra.mrb[2].mxu0 %vm150_vm1, %v139_v32  ;;  %v900_v32 = vld [vmem:[#allocation9 + $0x60] sm:$0xff] }
  0x7b   :  { %2766 = vmatpush3.bf16.msra.mxu0 %v3564_v7  ;;  %2088 = vmatprep.mubr.msk.f32.mxu0 %vm150_vm1, %v140_v33  ;;  %v901_v33 = vld [vmem:[#allocation9 + $0x68] sm:$0xff] }
  0x7c   :  { %2748 = vmatpush3.bf16.msra.mxu1 %v3574_v18  ;;  %2767 = vmatprep.subr.bf16.mxu0 %v3393_v0 }
  0x7d   :  { %2749 = vmatprep.subr.bf16.mxu1 %v3393_v0 }
  0x7e   :  { %2089 = vmatmul.mubr.msk.f32.gmra.mrb[4].mxu0 %vm150_vm1, %v141_v34  ;;  %v2953_v34 = vpack.c.bf16 %v901_v33, %v900_v32 }
  0x7f   :  { %2769 = vmatpush3.bf16.msra.mxu0 %v3569_v14  ;;  %2091 = vmatprep.mubr.msk.f32.mxu0 %vm150_vm1, %v142_v35  ;;  %v902_v35 = vld [vmem:[#allocation9 + $0x70] sm:$0xff] }
  0x80   :  { %2751 = vmatpush3.bf16.msra.mxu1 %v3581_v21  ;;  %2770 = vmatprep.subr.bf16.mxu0 %v3393_v0 }
  0x81   :  { %2752 = vmatprep.subr.bf16.mxu1 %v3393_v0 }
  0x82   :  { %2092 = vmatmul.mubr.msk.f32.gmra.mrb[6].mxu0 %vm150_vm1, %v143_v36  ;;  %v903_v36 = vld [vmem:[#allocation9 + $0x78] sm:$0xff] }
  0x83   :  { %2772 = vmatpush3.bf16.msra.mxu0 %v3574_v18  ;;  %2161 = vmatprep.mubr.msk.f32.mxu0 %vm3394_vm0, %v3395_v1 }
  0x84   :  { %2754 = vmatpush3.bf16.msra.mxu1 %v3587_v24  ;;  %2773 = vmatprep.subr.bf16.mxu0 %v3393_v0 }
  0x85   :  { %2755 = vmatprep.subr.bf16.mxu1 %v3393_v0 }
  0x87   :  { %2775 = vmatpush3.bf16.msra.mxu0 %v3581_v21 }
  0x88   :  { %2757 = vmatpush3.bf16.msra.mxu1 %v3593_v27  ;;  %2776 = vmatprep.subr.bf16.mxu0 %v3393_v0 }
  0x89   :  { %2758 = vmatprep.subr.bf16.mxu1 %v3393_v0 }
  0x8b   :  { %2778 = vmatpush3.bf16.msra.mxu0 %v3587_v24 }
  0x8c   :  { %2760 = vmatpush3.bf16.msra.mxu1 %v3599_v30  ;;  %2779 = vmatprep.subr.bf16.mxu0 %v3393_v0 }
  0x8d   :  { %2785 = vmatprep.subr.bf16.mxu1 %v3393_v0 }
  0x8f   :  { %2127 = vmatmul.mubr.f32.vlgmr.msra.gmra.mrb[0].mxu1 %v3395_v1  ;;  %2781 = vmatpush3.bf16.msra.mxu0 %v3593_v27 }
  0x90   :  { %2787 = vmatpush3.bf16.msra.mxu1 %v3561_v5  ;;  %2196 = vmatprep.mubr.msk.f32.mxu1 %vm3394_vm0, %v3395_v1 }
  0x91   :  { %2788 = vmatprep.subr.bf16.mxu1 %v3393_v0  ;;  %2782 = vmatprep.subr.bf16.mxu0 %v3393_v0 }
  0x93   :  { %2784 = vmatpush3.bf16.msra.mxu0 %v3599_v30 }
  0x94   :  { %2790 = vmatpush3.bf16.msra.mxu1 %v3564_v7  ;;  %2809 = vmatprep.subr.bf16.mxu0 %v3393_v0 }
  0x95   :  { %2791 = vmatprep.subr.bf16.mxu1 %v3393_v0 }
  0x98   :  { %2793 = vmatpush3.bf16.msra.mxu1 %v3569_v14 }
  0x99   :  { %2794 = vmatprep.subr.bf16.mxu1 %v3393_v0 }
  0x9c   :  { %2796 = vmatpush3.bf16.msra.mxu1 %v3574_v18 }
  0x9d   :  { %2797 = vmatprep.subr.bf16.mxu1 %v3393_v0 }
  0xa0   :  { %2799 = vmatpush3.bf16.msra.mxu1 %v3581_v21 }
  0xa1   :  { %2800 = vmatprep.subr.bf16.mxu1 %v3393_v0 }
  0xa4   :  { %2802 = vmatpush3.bf16.msra.mxu1 %v3587_v24 }
  0xa5   :  { %2803 = vmatprep.subr.bf16.mxu1 %v3393_v0 }
  0xa8   :  { %2805 = vmatpush3.bf16.msra.mxu1 %v3593_v27 }
  0xa9   :  { %2806 = vmatprep.subr.bf16.mxu1 %v3393_v0 }
  0xac   :  { %2808 = vmatpush3.bf16.msra.mxu1 %v3599_v30 }
  0xad   :  { %2833 = vmatprep.subr.bf16.mxu1 %v3393_v0 }
 0x149   :  { %v2084_v37 = vpop.f32.mrb[0].mxu0 }
 0x14a   :  { %v241_v38 = vpop.f32.mrb[1].mxu0  ;;  %v247_v51 = vadd.f32 %v2084_v37, %v3642_v39  ;;  %v2957_v37 = vpack.c.bf16 %v903_v36, %v902_v35 }
 0x14b   :  { %v242_v40 = vadd.f32 %v3642_v39, %v241_v38  ;;  %v904_v38 = vld [vmem:[#allocation11] sm:$0xff] }
 0x14d   :  { %v2087_v45 = vpop.f32.mrb[2].mxu0 }
 0x14e   :  { %v251_v46 = vpop.f32.mrb[3].mxu0  ;;  %v257_v61 = vadd.f32 %v2087_v45, %v3642_v39  ;;  %v908_v45 = vld [vmem:[#allocation11 + $0x20] sm:$0xff] }
 0x14f   :  { %v252_v56 = vadd.f32 %v3642_v39, %v251_v46  ;;  %v909_v46 = vld [vmem:[#allocation11 + $0x28] sm:$0xff] }
 0x151   :  { %v3666_v47 = vpop.f32.mrb[4].mxu0 }
 0x152   :  { %v3668_v48 = vpop.f32.mrb[5].mxu0  ;;  %v267_v12 = vadd.f32 %v3666_v47, %v3642_v39  ;;  %v3778_v47 = vpack.c.bf16 %v909_v46, %v908_v45 }
 0x153   :  { %v262_v4 = vadd.f32 %v3642_v39, %v3668_v48  ;;  %v910_v48 = vld [vmem:[#allocation11 + $0x30] sm:$0xff] }
 0x155   :  { %v3670_v49 = vpop.f32.mrb[6].mxu0 }
 0x156   :  { %v3672_v50 = vpop.f32.mrb[7].mxu0 }
 0x162   :  { %v356_v41 = vpop.f32.mrb[0].mxu1 }
 0x163   :  { %v360_v42 = vadd.f32 %v356_v41, %v242_v40  ;;  %v2128_v43 = vpop.f32.mrb[1].mxu1  ;;  %v905_v40 = vld [vmem:[#allocation11 + $0x8] sm:$0xff] }
 0x164   :  { %v3770_v41 = vpack.c.bf16 %v905_v40, %v904_v38  ;;  %v907_v43 = vld [vmem:[#allocation11 + $0x18] sm:$0xff] }
 0x165   :  { %3189 = vtanh.f32 %v360_v42  ;;  %v906_v42 = vld [vmem:[#allocation11 + $0x10] sm:$0xff] }
 0x16f   :  { %v3645_v44 = vpop.eup %3189 }
 0x170   :  { %2162 = vmatmul.mubr.f32.vlgmr.msra.gmra.mrb[8].mxu0 %v3645_v44 }
 0x171   :  { %2811 = vmatpush3.bf16.msra.mxu0 %v3561_v5  ;;  %2231 = vmatprep.mubr.msk.f32.mxu0 %vm3394_vm0, %v3395_v1 }
 0x172   :  { %2812 = vmatprep.subr.bf16.mxu0 %v3393_v0 }
 0x175   :  { %2814 = vmatpush3.bf16.msra.mxu0 %v3564_v7 }
 0x176   :  { %2815 = vmatprep.subr.bf16.mxu0 %v3393_v0 }
 0x179   :  { %2817 = vmatpush3.bf16.msra.mxu0 %v3569_v14 }
 0x17a   :  { %2818 = vmatprep.subr.bf16.mxu0 %v3393_v0 }
 0x17d   :  { %2820 = vmatpush3.bf16.msra.mxu0 %v3574_v18 }
 0x17e   :  { %2821 = vmatprep.subr.bf16.mxu0 %v3393_v0 }
 0x181   :  { %2823 = vmatpush3.bf16.msra.mxu0 %v3581_v21 }
 0x182   :  { %2824 = vmatprep.subr.bf16.mxu0 %v3393_v0 }
 0x185   :  { %2826 = vmatpush3.bf16.msra.mxu0 %v3587_v24 }
 0x186   :  { %2827 = vmatprep.subr.bf16.mxu0 %v3393_v0 }
 0x189   :  { %2829 = vmatpush3.bf16.msra.mxu0 %v3593_v27 }
 0x18a   :  { %2830 = vmatprep.subr.bf16.mxu0 %v3393_v0 }
 0x18d   :  { %2832 = vmatpush3.bf16.msra.mxu0 %v3599_v30 }
 0x18e   :  { %2857 = vmatprep.subr.bf16.mxu0 %v3393_v0 }
 0x243   :  { %v431_v52 = vpop.f32.mrb[8].mxu0 }
 0x244   :  { %v435_v53 = vadd.f32 %v431_v52, %v247_v51  ;;  %v2163_v54 = vpop.f32.mrb[9].mxu0  ;;  %v911_v51 = vld [vmem:[#allocation11 + $0x38] sm:$0xff] }
 0x245   :  { %v3782_v52 = vpack.c.bf16 %v911_v51, %v910_v48  ;;  %v913_v54 = vld [vmem:[#allocation11 + $0x48] sm:$0xff] }
 0x246   :  { %3191 = vtanh.f32 %v435_v53  ;;  %v912_v53 = vld [vmem:[#allocation11 + $0x40] sm:$0xff] }
 0x250   :  { %v3675_v55 = vpop.eup %3191 }
 0x251   :  { %2197 = vmatmul.mubr.f32.vlgmr.msra.gmra.mrb[2].mxu1 %v3675_v55 }
 0x252   :  { %2835 = vmatpush3.bf16.msra.mxu1 %v3561_v5  ;;  %2266 = vmatprep.mubr.msk.f32.mxu1 %vm3394_vm0, %v3395_v1 }
 0x253   :  { %2836 = vmatprep.subr.bf16.mxu1 %v3393_v0 }
 0x256   :  { %2838 = vmatpush3.bf16.msra.mxu1 %v3564_v7 }
 0x257   :  { %2839 = vmatprep.subr.bf16.mxu1 %v3393_v0 }
 0x25a   :  { %2841 = vmatpush3.bf16.msra.mxu1 %v3569_v14 }
 0x25b   :  { %2842 = vmatprep.subr.bf16.mxu1 %v3393_v0 }
 0x25e   :  { %2844 = vmatpush3.bf16.msra.mxu1 %v3574_v18 }
 0x25f   :  { %2845 = vmatprep.subr.bf16.mxu1 %v3393_v0 }
 0x262   :  { %2847 = vmatpush3.bf16.msra.mxu1 %v3581_v21 }
 0x263   :  { %2848 = vmatprep.subr.bf16.mxu1 %v3393_v0 }
 0x266   :  { %2850 = vmatpush3.bf16.msra.mxu1 %v3587_v24 }
 0x267   :  { %2851 = vmatprep.subr.bf16.mxu1 %v3393_v0 }
 0x26a   :  { %2853 = vmatpush3.bf16.msra.mxu1 %v3593_v27 }
 0x26b   :  { %2854 = vmatprep.subr.bf16.mxu1 %v3393_v0 }
 0x26e   :  { %2856 = vmatpush3.bf16.msra.mxu1 %v3599_v30 }
 0x26f   :  { %2881 = vmatprep.subr.bf16.mxu1 %v3393_v0 }
 0x324   :  { %v506_v57 = vpop.f32.mrb[2].mxu1 }
 0x325   :  { %v510_v58 = vadd.f32 %v506_v57, %v252_v56  ;;  %v2198_v59 = vpop.f32.mrb[3].mxu1  ;;  %v914_v56 = vld [vmem:[#allocation11 + $0x50] sm:$0xff]  ;;  %v915_v57 = vld [vmem:[#allocation11 + $0x58] sm:$0xff] }
 0x326   :  { %v916_v59 = vld [vmem:[#allocation11 + $0x60] sm:$0xff] }
 0x327   :  { %3193 = vtanh.f32 %v510_v58  ;;  %v3790_v58 = vpack.c.bf16 %v915_v57, %v914_v56  ;;  %v1635_v56 = vld [vmem:[#allocation12 + $0x18] sm:$0xff] }
 0x331   :  { %v3697_v60 = vpop.eup %3193 }
 0x332   :  { %2232 = vmatmul.mubr.f32.vlgmr.msra.gmra.mrb[10].mxu0 %v3697_v60 }
 0x333   :  { %2859 = vmatpush3.bf16.msra.mxu0 %v3561_v5  ;;  %2301 = vmatprep.mubr.msk.f32.mxu0 %vm3394_vm0, %v3395_v1 }
 0x334   :  { %2860 = vmatprep.subr.bf16.mxu0 %v3393_v0 }
 0x337   :  { %2862 = vmatpush3.bf16.msra.mxu0 %v3564_v7 }
 0x338   :  { %2863 = vmatprep.subr.bf16.mxu0 %v3393_v0 }
 0x33b   :  { %2865 = vmatpush3.bf16.msra.mxu0 %v3569_v14 }
 0x33c   :  { %2866 = vmatprep.subr.bf16.mxu0 %v3393_v0 }
 0x33f   :  { %2868 = vmatpush3.bf16.msra.mxu0 %v3574_v18 }
 0x340   :  { %2869 = vmatprep.subr.bf16.mxu0 %v3393_v0 }
 0x343   :  { %2871 = vmatpush3.bf16.msra.mxu0 %v3581_v21 }
 0x344   :  { %2872 = vmatprep.subr.bf16.mxu0 %v3393_v0 }
 0x347   :  { %2874 = vmatpush3.bf16.msra.mxu0 %v3587_v24 }
 0x348   :  { %2875 = vmatprep.subr.bf16.mxu0 %v3393_v0 }
 0x34b   :  { %2877 = vmatpush3.bf16.msra.mxu0 %v3593_v27 }
 0x34c   :  { %2878 = vmatprep.subr.bf16.mxu0 %v3393_v0 }
 0x34f   :  { %2880 = vmatpush3.bf16.msra.mxu0 %v3599_v30 }
 0x350   :  { %2905 = vmatprep.subr.bf16.mxu0 %v3393_v0 }
 0x405   :  { %v581_v62 = vpop.f32.mrb[10].mxu0 }
 0x406   :  { %v585_v63 = vadd.f32 %v581_v62, %v257_v61  ;;  %v2233_v2 = vpop.f32.mrb[11].mxu0  ;;  %v918_v62 = vld [vmem:[#allocation11 + $0x70] sm:$0xff] }
 0x408   :  { %3195 = vtanh.f32 %v585_v63  ;;  %v919_v63 = vld [vmem:[#allocation11 + $0x78] sm:$0xff] }
 0x409   :  { %v3798_v2 = vpack.c.bf16 %v919_v63, %v918_v62  ;;  %v1639_v62 = vld [vmem:[#allocation12 + $0x38] sm:$0xff] }
 0x412   :  { %v3719_v3 = vpop.eup %3195 }
 0x413   :  { %2267 = vmatmul.mubr.f32.vlgmr.msra.gmra.mrb[4].mxu1 %v3719_v3 }
 0x414   :  { %2883 = vmatpush3.bf16.msra.mxu1 %v3561_v5  ;;  %2336 = vmatprep.mubr.msk.f32.mxu1 %vm3394_vm0, %v3395_v1 }
 0x415   :  { %2884 = vmatprep.subr.bf16.mxu1 %v3393_v0 }
 0x418   :  { %2886 = vmatpush3.bf16.msra.mxu1 %v3564_v7 }
 0x419   :  { %2887 = vmatprep.subr.bf16.mxu1 %v3393_v0 }
 0x41c   :  { %2889 = vmatpush3.bf16.msra.mxu1 %v3569_v14 }
 0x41d   :  { %2890 = vmatprep.subr.bf16.mxu1 %v3393_v0 }
 0x420   :  { %2892 = vmatpush3.bf16.msra.mxu1 %v3574_v18 }
 0x421   :  { %2893 = vmatprep.subr.bf16.mxu1 %v3393_v0 }
 0x424   :  { %2895 = vmatpush3.bf16.msra.mxu1 %v3581_v21 }
 0x425   :  { %2896 = vmatprep.subr.bf16.mxu1 %v3393_v0 }
 0x428   :  { %2898 = vmatpush3.bf16.msra.mxu1 %v3587_v24 }
 0x429   :  { %2899 = vmatprep.subr.bf16.mxu1 %v3393_v0 }
 0x42c   :  { %2901 = vmatpush3.bf16.msra.mxu1 %v3593_v27 }
 0x42d   :  { %2902 = vmatprep.subr.bf16.mxu1 %v3393_v0 }
 0x430   :  { %2904 = vmatpush3.bf16.msra.mxu1 %v3599_v30 }
 0x4e6   :  { %v656_v6 = vpop.f32.mrb[4].mxu1 }
 0x4e7   :  { %v660_v8 = vadd.f32 %v656_v6, %v262_v4  ;;  %v2268_v9 = vpop.f32.mrb[5].mxu1 }
 0x4e9   :  { %3197 = vtanh.f32 %v660_v8 }
 0x4f3   :  { %v3741_v10 = vpop.eup %3197 }
 0x4f4   :  { %2302 = vmatmul.mubr.f32.vlgmr.msra.gmra.mrb[12].mxu0 %v3741_v10 }
 0x4f5   :  { %2907 = vmatpush3.bf16.msra.mxu0 %v3561_v5  ;;  %2371 = vmatprep.mubr.msk.f32.mxu0 %vm3394_vm0, %v3395_v1  ;;  %v888_v5 = vld [vmem:[#allocation9] sm:$0xff] }
 0x4f6   :  { %2908 = vmatprep.subr.bf16.mxu0 %v3393_v0 }
 0x4f9   :  { %2910 = vmatpush3.bf16.msra.mxu0 %v3564_v7  ;;  %v889_v7 = vld [vmem:[#allocation9 + $0x8] sm:$0xff] }
 0x4fa   :  { %2911 = vmatprep.subr.bf16.mxu0 %v3393_v0  ;;  %v2929_v11 = vpack.c.bf16 %v889_v7, %v888_v5 }
 0x4fc   :  { %2930 = vmatprep.subr.bf16.mxu1 %v2929_v11 }
 0x4fd   :  { %2913 = vmatpush3.bf16.msra.mxu0 %v3569_v14 }
 0x4fe   :  { %2914 = vmatprep.subr.bf16.mxu0 %v3393_v0 }
 0x501   :  { %2916 = vmatpush3.bf16.msra.mxu0 %v3574_v18  ;;  %v2933_v18 = vpack.c.bf16 %v891_v17, %v890_v16 }
 0x502   :  { %2917 = vmatprep.subr.bf16.mxu0 %v3393_v0 }
 0x505   :  { %2919 = vmatpush3.bf16.msra.mxu0 %v3581_v21  ;;  %v893_v21 = vld [vmem:[#allocation9 + $0x28] sm:$0xff] }
 0x506   :  { %2920 = vmatprep.subr.bf16.mxu0 %v3393_v0  ;;  %v2937_v22 = vpack.c.bf16 %v893_v21, %v892_v20 }
 0x509   :  { %2922 = vmatpush3.bf16.msra.mxu0 %v3587_v24  ;;  %v895_v24 = vld [vmem:[#allocation9 + $0x38] sm:$0xff] }
 0x50a   :  { %2923 = vmatprep.subr.bf16.mxu0 %v3393_v0  ;;  %v2941_v25 = vpack.c.bf16 %v895_v24, %v894_v23 }
 0x50d   :  { %2925 = vmatpush3.bf16.msra.mxu0 %v3593_v27  ;;  %v897_v27 = vld [vmem:[#allocation9 + $0x48] sm:$0xff] }
 0x50e   :  { %2926 = vmatprep.subr.bf16.mxu0 %v3393_v0  ;;  %v2945_v28 = vpack.c.bf16 %v897_v27, %v896_v26 }
 0x511   :  { %2928 = vmatpush3.bf16.msra.mxu0 %v3599_v30  ;;  %v899_v30 = vld [vmem:[#allocation9 + $0x58] sm:$0xff] }
 0x512   :  { %2961 = vmatprep.subr.bf16.mxu0 %v3393_v0  ;;  %v2949_v31 = vpack.c.bf16 %v899_v30, %v898_v29 }
 0x5c7   :  { %v731_v13 = vpop.f32.mrb[12].mxu0 }
 0x5c8   :  { %v735_v14 = vadd.f32 %v731_v13, %v267_v12  ;;  %v2303_v15 = vpop.f32.mrb[13].mxu0  ;;  %v277_v13 = vadd.f32 %v3670_v49, %v3642_v39 }
 0x5ca   :  { %3199 = vtanh.f32 %v735_v14 }
 0x5d4   :  { %v3200_v19 = vpop.eup %3199 }
 0x5d5   :  { %2337 = vmatmul.mubr.f32.vlgmr.msra.gmra.mrb[6].mxu1 %v3200_v19 }
 0x5d6   :  { %2932 = vmatpush3.bf16.msra.mxu1 %v2929_v11  ;;  %2406 = vmatprep.mubr.f32.mxu1 %v3645_v44  ;;  %v3774_v44 = vpack.c.bf16 %v907_v43, %v906_v42 }
 0x5d7   :  { %2934 = vmatprep.subr.bf16.mxu1 %v2933_v18 }
 0x5da   :  { %2936 = vmatpush3.bf16.msra.mxu1 %v2933_v18  ;;  %v3858_v18 = vld [vmem:[%s3998_s6] ss:$0 sm:$0xff] }
 0x5db   :  { %2938 = vmatprep.subr.bf16.mxu1 %v2937_v22 }
 0x5de   :  { %2940 = vmatpush3.bf16.msra.mxu1 %v2937_v22 }
 0x5df   :  { %2942 = vmatprep.subr.bf16.mxu1 %v2941_v25 }
 0x5e2   :  { %2944 = vmatpush3.bf16.msra.mxu1 %v2941_v25 }
 0x5e3   :  { %2946 = vmatprep.subr.bf16.mxu1 %v2945_v28 }
 0x5e6   :  { %2948 = vmatpush3.bf16.msra.mxu1 %v2945_v28 }
 0x5e7   :  { %2950 = vmatprep.subr.bf16.mxu1 %v2949_v31 }
 0x5ea   :  { %2952 = vmatpush3.bf16.msra.mxu1 %v2949_v31 }
 0x5eb   :  { %2954 = vmatprep.subr.bf16.mxu1 %v2953_v34 }
 0x5ee   :  { %2956 = vmatpush3.bf16.msra.mxu1 %v2953_v34 }
 0x5ef   :  { %2958 = vmatprep.subr.bf16.mxu1 %v2957_v37 }
 0x5f2   :  { %2960 = vmatpush3.bf16.msra.mxu1 %v2957_v37 }
 0x5f3   :  { %2985 = vmatprep.subr.bf16.mxu1 %v3393_v0 }
 0x5f5   :  { %2407 = vmatmul.mubr.f32.vlgmr.msra.gmra.mrb[8].mxu1 %v3675_v55  ;;  %v3786_v55 = vpack.c.bf16 %v913_v54, %v912_v53  ;;  %v1633_v53 = vld [vmem:[#allocation12 + $0x8] sm:$0xff]  ;;  %v1634_v54 = vld [vmem:[#allocation12 + $0x10] sm:$0xff] }
 0x5f6   :  { %2409 = vmatprep.mubr.f32.mxu1 %v3697_v60  ;;  %2987 = vmatpush3.bf16.msra.mxu1 %v3770_v41  ;;  %v917_v60 = vld [vmem:[#allocation11 + $0x68] sm:$0xff]  ;;  %v3157_v57 = vpack.c.bf16 %v1635_v56, %v1634_v54 }
 0x5f7   :  { %2988 = vmatprep.subr.bf16.mxu1 %v3393_v0  ;;  %v3794_v61 = vpack.c.bf16 %v917_v60, %v916_v59  ;;  %v1637_v59 = vld [vmem:[#allocation12 + $0x28] sm:$0xff] }
 0x5f9   :  { %2410 = vmatmul.mubr.f32.gmra.mrb[10].mxu1 %v3719_v3  ;;  %v272_v3 = vadd.f32 %v3642_v39, %v3672_v50 }
 0x5fa   :  { %2412 = vmatprep.mubr.f32.mxu1 %v3741_v10  ;;  %2990 = vmatpush3.bf16.msra.mxu1 %v3774_v44 }
 0x5fb   :  { %2991 = vmatprep.subr.bf16.mxu1 %v3393_v0 }
 0x5fd   :  { %2413 = vmatmul.mubr.f32.gmra.mrb[12].mxu1 %v3200_v19 }
 0x5fe   :  { %2993 = vmatpush3.bf16.msra.mxu1 %v3778_v47 }
 0x5ff   :  { %2994 = vmatprep.subr.bf16.mxu1 %v3393_v0 }
 0x602   :  { %2996 = vmatpush3.bf16.msra.mxu1 %v3782_v52 }
 0x603   :  { %2997 = vmatprep.subr.bf16.mxu1 %v3393_v0 }
 0x606   :  { %2999 = vmatpush3.bf16.msra.mxu1 %v3786_v55 }
 0x607   :  { %3000 = vmatprep.subr.bf16.mxu1 %v3393_v0 }
 0x60a   :  { %3002 = vmatpush3.bf16.msra.mxu1 %v3790_v58 }
 0x60b   :  { %3003 = vmatprep.subr.bf16.mxu1 %v3393_v0 }
 0x60e   :  { %3005 = vmatpush3.bf16.msra.mxu1 %v3794_v61 }
 0x60f   :  { %3006 = vmatprep.subr.bf16.mxu1 %v3393_v0 }
 0x612   :  { %3008 = vmatpush3.bf16.msra.mxu1 %v3798_v2 }
 0x613   :  { %3033 = vmatprep.subr.bf16.mxu1 %v3393_v0 }
 0x6a8   :  { %v806_v4 = vpop.f32.mrb[6].mxu1 }
 0x6a9   :  { %v810_v6 = vadd.f32 %v806_v4, %v272_v3  ;;  %v2338_v8 = vpop.f32.mrb[7].mxu1 }
 0x6ab   :  { %3201 = vtanh.f32 %v810_v6 }
 0x6b5   :  { %v3202_v9 = vpop.eup %3201 }
 0x6b6   :  { %2372 = vmatmul.mubr.f32.vlgmr.msra.gmra.mrb[14].mxu0 %v3202_v9  ;;  %2415 = vmatprep.mubr.f32.mxu1 %v3202_v9 }
 0x6b7   :  { %2963 = vmatpush3.bf16.msra.mxu0 %v3770_v41  ;;  %2450 = vmatprep.mubr.msk.f32.mxu0 %vm3394_vm0, %v3395_v1 }
 0x6b8   :  { %2964 = vmatprep.subr.bf16.mxu0 %v3393_v0 }
 0x6bb   :  { %2966 = vmatpush3.bf16.msra.mxu0 %v3774_v44 }
 0x6bc   :  { %2967 = vmatprep.subr.bf16.mxu0 %v3393_v0 }
 0x6bf   :  { %2969 = vmatpush3.bf16.msra.mxu0 %v3778_v47 }
 0x6c0   :  { %2970 = vmatprep.subr.bf16.mxu0 %v3393_v0 }
 0x6c3   :  { %2972 = vmatpush3.bf16.msra.mxu0 %v3782_v52 }
 0x6c4   :  { %2973 = vmatprep.subr.bf16.mxu0 %v3393_v0 }
 0x6c7   :  { %2975 = vmatpush3.bf16.msra.mxu0 %v3786_v55 }
 0x6c8   :  { %v3815_v50 = vpop.f32.mrb[8].mxu1  ;;  %2976 = vmatprep.subr.bf16.mxu0 %v3393_v0 }
 0x6c9   :  { %v1001_v10 = vpop.f32.mrb[9].mxu1  ;;  %v1007_v24 = vadd.f32 %v3815_v50, %v3858_v18 }
 0x6ca   :  { %v1002_v19 = vadd.f32 %v3858_v18, %v1001_v10  ;;  %v1642_v10 = vld [vmem:[#allocation12 + $0x50] sm:$0xff] }
 0x6cb   :  { %2978 = vmatpush3.bf16.msra.mxu0 %v3790_v58 }
 0x6cc   :  { %v3819_v5 = vpop.f32.mrb[10].mxu1  ;;  %2979 = vmatprep.subr.bf16.mxu0 %v3393_v0 }
 0x6cd   :  { %v3822_v7 = vpop.f32.mrb[11].mxu1  ;;  %v1017_v34 = vadd.f32 %v3819_v5, %v3858_v18  ;;  %v1643_v5 = vld [vmem:[#allocation12 + $0x58] sm:$0xff] }
 0x6ce   :  { %v1012_v29 = vadd.f32 %v3858_v18, %v3822_v7  ;;  %v3169_v7 = vpack.c.bf16 %v1643_v5, %v1642_v10 }
 0x6cf   :  { %2981 = vmatpush3.bf16.msra.mxu0 %v3794_v61 }
 0x6d0   :  { %v3825_v11 = vpop.f32.mrb[12].mxu1  ;;  %2982 = vmatprep.subr.bf16.mxu0 %v3393_v0 }
 0x6d1   :  { %v3828_v12 = vpop.f32.mrb[13].mxu1 }
 0x6d2   :  { %v1022_v40 = vadd.f32 %v3858_v18, %v3828_v12  ;;  %v1645_v12 = vld [vmem:[#allocation12 + $0x68] sm:$0xff] }
 0x6d3   :  { %2984 = vmatpush3.bf16.msra.mxu0 %v3798_v2 }
 0x6d4   :  { %3009 = vmatprep.subr.bf16.mxu0 %v3393_v0 }
 0x6d6   :  { %2451 = vmatmul.mubr.f32.vlgmr.msra.gmra.mrb[16].mxu0 %v3395_v1 }
 0x6d7   :  { %3011 = vmatpush3.bf16.msra.mxu0 %v3770_v41  ;;  %2520 = vmatprep.mubr.msk.f32.mxu0 %vm3394_vm0, %v3395_v1 }
 0x6d8   :  { %3012 = vmatprep.subr.bf16.mxu0 %v3393_v0 }
 0x6db   :  { %3014 = vmatpush3.bf16.msra.mxu0 %v3774_v44 }
 0x6dc   :  { %3015 = vmatprep.subr.bf16.mxu0 %v3393_v0 }
 0x6df   :  { %3017 = vmatpush3.bf16.msra.mxu0 %v3778_v47 }
 0x6e0   :  { %3018 = vmatprep.subr.bf16.mxu0 %v3393_v0 }
 0x6e3   :  { %3020 = vmatpush3.bf16.msra.mxu0 %v3782_v52 }
 0x6e4   :  { %3021 = vmatprep.subr.bf16.mxu0 %v3393_v0 }
 0x6e7   :  { %3023 = vmatpush3.bf16.msra.mxu0 %v3786_v55 }
 0x6e8   :  { %3024 = vmatprep.subr.bf16.mxu0 %v3393_v0 }
 0x6eb   :  { %3026 = vmatpush3.bf16.msra.mxu0 %v3790_v58 }
 0x6ec   :  { %3027 = vmatprep.subr.bf16.mxu0 %v3393_v0 }
 0x6ef   :  { %3029 = vmatpush3.bf16.msra.mxu0 %v3794_v61 }
 0x6f0   :  { %3030 = vmatprep.subr.bf16.mxu0 %v3393_v0 }
 0x6f3   :  { %3032 = vmatpush3.bf16.msra.mxu0 %v3798_v2 }
 0x6f4   :  { %3057 = vmatprep.subr.bf16.mxu0 %v3393_v0 }
 0x789   :  { %v881_v14 = vpop.f32.mrb[14].mxu0 }
 0x78a   :  { %v885_v15 = vadd.f32 %v881_v14, %v277_v13  ;;  %v2373_v16 = vpop.f32.mrb[15].mxu0  ;;  %v1646_v14 = vld [vmem:[#allocation12 + $0x70] sm:$0xff] }
 0x78c   :  { %3203 = vtanh.f32 %v885_v15  ;;  %v1647_v15 = vld [vmem:[#allocation12 + $0x78] sm:$0xff] }
 0x78d   :  { %v3175_v16 = vpack.c.bf16 %v1647_v15, %v1646_v14 }
 0x796   :  { %v3204_v17 = vpop.eup %3203 }
 0x797   :  { %2416 = vmatmul.mubr.f32.gmra.mrb[14].mxu1 %v3204_v17 }
 0x798   :  { %2485 = vmatprep.mubr.msk.f32.mxu1 %vm3394_vm0, %v3395_v1 }
 0x7a9   :  { %v1115_v20 = vpop.f32.mrb[16].mxu0 }
 0x7aa   :  { %v1119_v21 = vadd.f32 %v1115_v20, %v1002_v19  ;;  %v2452_v22 = vpop.f32.mrb[17].mxu0 }
 0x7ac   :  { %3205 = vtanh.f32 %v1119_v21 }
 0x7b6   :  { %v3206_v39 = vpop.eup %3205 }
 0x7b7   :  { %2486 = vmatmul.mubr.f32.vlgmr.msra.gmra.mrb[16].mxu1 %v3206_v39  ;;  %v1754_v39 = vld [vmem:[%s4000_s8] ss:$0 sm:$0xff] }
 0x7b8   :  { %3035 = vmatpush3.bf16.msra.mxu1 %v3770_v41  ;;  %2555 = vmatprep.mubr.msk.f32.mxu1 %vm3394_vm0, %v3395_v1 }
 0x7b9   :  { %3036 = vmatprep.subr.bf16.mxu1 %v3393_v0 }
 0x7bc   :  { %3038 = vmatpush3.bf16.msra.mxu1 %v3774_v44 }
 0x7bd   :  { %3039 = vmatprep.subr.bf16.mxu1 %v3393_v0 }
 0x7c0   :  { %3041 = vmatpush3.bf16.msra.mxu1 %v3778_v47 }
 0x7c1   :  { %3042 = vmatprep.subr.bf16.mxu1 %v3393_v0 }
 0x7c4   :  { %3044 = vmatpush3.bf16.msra.mxu1 %v3782_v52 }
 0x7c5   :  { %3045 = vmatprep.subr.bf16.mxu1 %v3393_v0 }
 0x7c8   :  { %3047 = vmatpush3.bf16.msra.mxu1 %v3786_v55 }
 0x7c9   :  { %3048 = vmatprep.subr.bf16.mxu1 %v3393_v0 }
 0x7cc   :  { %3050 = vmatpush3.bf16.msra.mxu1 %v3790_v58 }
 0x7cd   :  { %3051 = vmatprep.subr.bf16.mxu1 %v3393_v0 }
 0x7d0   :  { %3053 = vmatpush3.bf16.msra.mxu1 %v3794_v61 }
 0x7d1   :  { %3054 = vmatprep.subr.bf16.mxu1 %v3393_v0 }
 0x7d4   :  { %3056 = vmatpush3.bf16.msra.mxu1 %v3798_v2 }
 0x7d5   :  { %3081 = vmatprep.subr.bf16.mxu1 %v3393_v0 }
 0x86a   :  { %v3879_v49 = vpop.f32.mrb[14].mxu1 }
 0x86b   :  { %v3881_v23 = vpop.f32.mrb[15].mxu1  ;;  %v1037_v17 = vadd.f32 %v3879_v49, %v3858_v18 }
 0x86c   :  { %v1032_v4 = vadd.f32 %v3858_v18, %v3881_v23 }
 0x88a   :  { %v1188_v25 = vpop.f32.mrb[16].mxu1 }
 0x88b   :  { %v1192_v26 = vadd.f32 %v1188_v25, %v1007_v24  ;;  %v2487_v27 = vpop.f32.mrb[17].mxu1 }
 0x88d   :  { %3207 = vtanh.f32 %v1192_v26 }
 0x897   :  { %v3208_v28 = vpop.eup %3207 }
 0x898   :  { %2521 = vmatmul.mubr.f32.vlgmr.msra.gmra.mrb[18].mxu0 %v3208_v28 }
 0x899   :  { %3059 = vmatpush3.bf16.msra.mxu0 %v3770_v41  ;;  %2590 = vmatprep.mubr.msk.f32.mxu0 %vm3394_vm0, %v3395_v1 }
 0x89a   :  { %3060 = vmatprep.subr.bf16.mxu0 %v3393_v0 }
 0x89d   :  { %3062 = vmatpush3.bf16.msra.mxu0 %v3774_v44 }
 0x89e   :  { %3063 = vmatprep.subr.bf16.mxu0 %v3393_v0 }
 0x8a1   :  { %3065 = vmatpush3.bf16.msra.mxu0 %v3778_v47 }
 0x8a2   :  { %3066 = vmatprep.subr.bf16.mxu0 %v3393_v0 }
 0x8a5   :  { %3068 = vmatpush3.bf16.msra.mxu0 %v3782_v52 }
 0x8a6   :  { %3069 = vmatprep.subr.bf16.mxu0 %v3393_v0 }
 0x8a9   :  { %3071 = vmatpush3.bf16.msra.mxu0 %v3786_v55 }
 0x8aa   :  { %3072 = vmatprep.subr.bf16.mxu0 %v3393_v0 }
 0x8ad   :  { %3074 = vmatpush3.bf16.msra.mxu0 %v3790_v58 }
 0x8ae   :  { %3075 = vmatprep.subr.bf16.mxu0 %v3393_v0 }
 0x8b1   :  { %3077 = vmatpush3.bf16.msra.mxu0 %v3794_v61 }
 0x8b2   :  { %3078 = vmatprep.subr.bf16.mxu0 %v3393_v0 }
 0x8b5   :  { %3080 = vmatpush3.bf16.msra.mxu0 %v3798_v2 }
 0x8b6   :  { %3105 = vmatprep.subr.bf16.mxu0 %v3393_v0 }
 0x96b   :  { %v1261_v30 = vpop.f32.mrb[18].mxu0 }
 0x96c   :  { %v1265_v31 = vadd.f32 %v1261_v30, %v1012_v29  ;;  %v2522_v32 = vpop.f32.mrb[19].mxu0 }
 0x96e   :  { %3209 = vtanh.f32 %v1265_v31 }
 0x978   :  { %v3210_v33 = vpop.eup %3209 }
 0x979   :  { %2556 = vmatmul.mubr.f32.vlgmr.msra.gmra.mrb[18].mxu1 %v3210_v33 }
 0x97a   :  { %3083 = vmatpush3.bf16.msra.mxu1 %v3770_v41  ;;  %2625 = vmatprep.mubr.msk.f32.mxu1 %vm3394_vm0, %v3395_v1 }
 0x97b   :  { %3084 = vmatprep.subr.bf16.mxu1 %v3393_v0 }
 0x97e   :  { %3086 = vmatpush3.bf16.msra.mxu1 %v3774_v44 }
 0x97f   :  { %3087 = vmatprep.subr.bf16.mxu1 %v3393_v0 }
 0x982   :  { %3089 = vmatpush3.bf16.msra.mxu1 %v3778_v47 }
 0x983   :  { %3090 = vmatprep.subr.bf16.mxu1 %v3393_v0 }
 0x986   :  { %3092 = vmatpush3.bf16.msra.mxu1 %v3782_v52 }
 0x987   :  { %3093 = vmatprep.subr.bf16.mxu1 %v3393_v0 }
 0x98a   :  { %3095 = vmatpush3.bf16.msra.mxu1 %v3786_v55 }
 0x98b   :  { %3096 = vmatprep.subr.bf16.mxu1 %v3393_v0 }
 0x98e   :  { %3098 = vmatpush3.bf16.msra.mxu1 %v3790_v58 }
 0x98f   :  { %3099 = vmatprep.subr.bf16.mxu1 %v3393_v0 }
 0x992   :  { %3101 = vmatpush3.bf16.msra.mxu1 %v3794_v61 }
 0x993   :  { %3102 = vmatprep.subr.bf16.mxu1 %v3393_v0 }
 0x996   :  { %3104 = vmatpush3.bf16.msra.mxu1 %v3798_v2 }
 0x997   :  { %3129 = vmatprep.subr.bf16.mxu1 %v3393_v0 }
 0xa4c   :  { %v1334_v35 = vpop.f32.mrb[18].mxu1 }
 0xa4d   :  { %v1338_v36 = vadd.f32 %v1334_v35, %v1017_v34  ;;  %v2557_v37 = vpop.f32.mrb[19].mxu1 }
 0xa4f   :  { %3211 = vtanh.f32 %v1338_v36 }
 0xa59   :  { %v3212_v38 = vpop.eup %3211 }
 0xa5a   :  { %2591 = vmatmul.mubr.f32.vlgmr.msra.gmra.mrb[20].mxu0 %v3212_v38 }
 0xa5b   :  { %3107 = vmatpush3.bf16.msra.mxu0 %v3770_v41  ;;  %2660 = vmatprep.mubr.msk.f32.mxu0 %vm3394_vm0, %v3395_v1 }
 0xa5c   :  { %3108 = vmatprep.subr.bf16.mxu0 %v3393_v0 }
 0xa5f   :  { %3110 = vmatpush3.bf16.msra.mxu0 %v3774_v44 }
 0xa60   :  { %3111 = vmatprep.subr.bf16.mxu0 %v3393_v0 }
 0xa63   :  { %3113 = vmatpush3.bf16.msra.mxu0 %v3778_v47 }
 0xa64   :  { %3114 = vmatprep.subr.bf16.mxu0 %v3393_v0 }
 0xa67   :  { %3116 = vmatpush3.bf16.msra.mxu0 %v3782_v52 }
 0xa68   :  { %3117 = vmatprep.subr.bf16.mxu0 %v3393_v0 }
 0xa6b   :  { %3119 = vmatpush3.bf16.msra.mxu0 %v3786_v55 }
 0xa6c   :  { %3120 = vmatprep.subr.bf16.mxu0 %v3393_v0 }
 0xa6f   :  { %3122 = vmatpush3.bf16.msra.mxu0 %v3790_v58 }
 0xa70   :  { %3123 = vmatprep.subr.bf16.mxu0 %v3393_v0 }
 0xa73   :  { %3125 = vmatpush3.bf16.msra.mxu0 %v3794_v61 }
 0xa74   :  { %3126 = vmatprep.subr.bf16.mxu0 %v3393_v0 }
 0xa77   :  { %3128 = vmatpush3.bf16.msra.mxu0 %v3798_v2 }
 0xa78   :  { %3153 = vmatprep.subr.bf16.mxu0 %v3393_v0 }
 0xb2d   :  { %v1407_v42 = vpop.f32.mrb[20].mxu0 }
 0xb2e   :  { %v1411_v43 = vadd.f32 %v1407_v42, %v1022_v40  ;;  %v2592_v45 = vpop.f32.mrb[21].mxu0 }
 0xb30   :  { %3213 = vtanh.f32 %v1411_v43 }
 0xb3a   :  { %v3214_v46 = vpop.eup %3213 }
 0xb3b   :  { %2626 = vmatmul.mubr.f32.vlgmr.msra.gmra.mrb[20].mxu1 %v3214_v46 }
 0xb3c   :  { %3131 = vmatpush3.bf16.msra.mxu1 %v3770_v41  ;;  %2695 = vmatprep.mubr.msk.f32.mxu1 %vm3394_vm0, %v3395_v1  ;;  %v1027_v41 = vadd.f32 %v3825_v11, %v3858_v18  ;;  %v1644_v11 = vld [vmem:[#allocation12 + $0x60] sm:$0xff] }
 0xb3d   :  { %3132 = vmatprep.subr.bf16.mxu1 %v3393_v0  ;;  %v3172_v13 = vpack.c.bf16 %v1645_v12, %v1644_v11 }
 0xb40   :  { %3134 = vmatpush3.bf16.msra.mxu1 %v3774_v44 }
 0xb41   :  { %3135 = vmatprep.subr.bf16.mxu1 %v3393_v0 }
 0xb44   :  { %3137 = vmatpush3.bf16.msra.mxu1 %v3778_v47 }
 0xb45   :  { %3138 = vmatprep.subr.bf16.mxu1 %v3393_v0 }
 0xb48   :  { %3140 = vmatpush3.bf16.msra.mxu1 %v3782_v52  ;;  %v1632_v52 = vld [vmem:[#allocation12] sm:$0xff] }
 0xb49   :  { %3141 = vmatprep.subr.bf16.mxu1 %v3393_v0 }
 0xb4c   :  { %3143 = vmatpush3.bf16.msra.mxu1 %v3786_v55  ;;  %v3154_v55 = vpack.c.bf16 %v1633_v53, %v1632_v52 }
 0xb4d   :  { %3144 = vmatprep.subr.bf16.mxu1 %v3393_v0 }
 0xb50   :  { %3146 = vmatpush3.bf16.msra.mxu1 %v3790_v58  ;;  %v1636_v58 = vld [vmem:[#allocation12 + $0x20] sm:$0xff] }
 0xb51   :  { %3147 = vmatprep.subr.bf16.mxu1 %v3393_v0  ;;  %v3160_v60 = vpack.c.bf16 %v1637_v59, %v1636_v58 }
 0xb54   :  { %3149 = vmatpush3.bf16.msra.mxu1 %v3794_v61  ;;  %v1638_v61 = vld [vmem:[#allocation12 + $0x30] sm:$0xff] }
 0xb55   :  { %3150 = vmatprep.subr.bf16.mxu1 %v3393_v0  ;;  %v3163_v63 = vpack.c.bf16 %v1639_v62, %v1638_v61 }
 0xb58   :  { %3152 = vmatpush3.bf16.msra.mxu1 %v3798_v2  ;;  %v1641_v2 = vld [vmem:[#allocation12 + $0x48] sm:$0xff] }
 0xc0e   :  { %v1480_v44 = vpop.f32.mrb[20].mxu1 }
 0xc0f   :  { %v1484_v47 = vadd.f32 %v1480_v44, %v1027_v41  ;;  %v2627_v48 = vpop.f32.mrb[21].mxu1 }
 0xc11   :  { %3215 = vtanh.f32 %v1484_v47 }
 0xc1b   :  { %v3216_v51 = vpop.eup %3215 }
 0xc1c   :  { %2661 = vmatmul.mubr.f32.vlgmr.msra.gmra.mrb[22].mxu0 %v3216_v51 }
 0xc1d   :  { %2730 = vmatprep.mubr.msk.f32.mxu0 %vm3394_vm0, %v3395_v1  ;;  %3155 = vmatpush3.bf16.msra.mxu0 %v3154_v55  ;;  %v1640_v1 = vld [vmem:[#allocation12 + $0x40] sm:$0xff] }
 0xc1e   :  { %3156 = vmatprep.subr.bf16.mxu0 %v3393_v0  ;;  %v3166_v3 = vpack.c.bf16 %v1641_v2, %v1640_v1 }
 0xc21   :  { %3158 = vmatpush3.bf16.msra.mxu0 %v3157_v57 }
 0xc22   :  { %3159 = vmatprep.subr.bf16.mxu0 %v3393_v0 }
 0xc25   :  { %3161 = vmatpush3.bf16.msra.mxu0 %v3160_v60 }
 0xc26   :  { %3162 = vmatprep.subr.bf16.mxu0 %v3393_v0 }
 0xc29   :  { %3164 = vmatpush3.bf16.msra.mxu0 %v3163_v63 }
 0xc2a   :  { %3165 = vmatprep.subr.bf16.mxu0 %v3393_v0 }
 0xc2d   :  { %3167 = vmatpush3.bf16.msra.mxu0 %v3166_v3 }
 0xc2e   :  { %3168 = vmatprep.subr.bf16.mxu0 %v3393_v0 }
 0xc31   :  { %3170 = vmatpush3.bf16.msra.mxu0 %v3169_v7 }
 0xc32   :  { %3171 = vmatprep.subr.bf16.mxu0 %v3393_v0 }
 0xc35   :  { %3173 = vmatpush3.bf16.msra.mxu0 %v3172_v13 }
 0xc36   :  { %3174 = vmatprep.subr.bf16.mxu0 %v3393_v0 }
 0xc39   :  { %3176 = vmatpush3.bf16.msra.mxu0 %v3175_v16 }
 0xcef   :  { %v1553_v6 = vpop.f32.mrb[22].mxu0 }
 0xcf0   :  { %v1557_v8 = vadd.f32 %v1553_v6, %v1032_v4  ;;  %v2662_v9 = vpop.f32.mrb[23].mxu0 }
 0xcf2   :  { %3217 = vtanh.f32 %v1557_v8 }
 0xcfc   :  { %v3218_v50 = vpop.eup %3217 }
 0xcfd   :  { %2696 = vmatmul.mubr.f32.vlgmr.msra.gmra.mrb[22].mxu1 %v3218_v50 }
 0xdd0   :  { %v1626_v19 = vpop.f32.mrb[22].mxu1 }
 0xdd1   :  { %v1630_v20 = vadd.f32 %v1626_v19, %v1037_v17  ;;  %v2697_v21 = vpop.f32.mrb[23].mxu1 }
 0xdd3   :  { %3219 = vtanh.f32 %v1630_v20 }
 0xddd   :  { %v3220_v22 = vpop.eup %3219 }
 0xdde   :  { %2731 = vmatmul.mubr.f32.vlgmr.msra.gmra.mrb[24].mxu0 %v3220_v22 }
 0xeb1   :  { %v1721_v23 = vpop.f32.mrb[24].mxu0 }
 0xeb2   :  { %v1722_v24 = vadd.f32 %v1754_v39, %v1721_v23  ;;  %v2732_v25 = vpop.f32.mrb[25].mxu0 }
 0xeb4   :  { %1725 = vst [vmem:[#allocation14] sm:$0xff] %v1722_v24 }
 0xeb5   :  { %3364 = shalt.err (!%p3361_p10)
}
 0xeb6   :  { %s3365_s25 = scalar_lea.hbm %s4001_s9, 128 }
 0xeb7   :  { %p3366_p11 = scmp.ne.s32.totalorder %s4001_s9, %s3365_s25  ;;  %p3369_p12 = scmp.lt.u32.totalorder %s3365_s25, %s4001_s9 }
 0xeb9   :  { %p3371_p13 = pnand %p3369_p12, %p3366_p11 }
 0xebb   :  { %3374 = shalt.err (!%p3371_p13)
}
 0xebc   :  { %1735 = dma.vmem_to_hbm [thread:$0]  %s1733_s19, 128, %s4001_s9, [#allocation5]  }
 0xebd   :  { %3383 = dma.done.wait [#allocation5], 128  }
 0xebe   :  { %3384 = vsyncadd [#allocation5], 4294967168 }
 0xebf   :  { %1739 = vsyncpa [#allocation4], 1 }
 0xec0   :  { %1740 = vsyncpa [#allocation7], 1 }
 0xec1   :  { %1741 = vsyncpa [#allocation10], 1 }
 0xec2   :  { %1742 = vsyncpa [#allocation13], 1 }
 0xec3   :  { %1743 = vsyncpa [#allocation5], 1 }

</bundles_post_ra>
